<compile_context>
chip_gen: v6e
topology: v6e:2x2x1
jax: 0.10.0
libtpu: 0.0.40
codegen_flags: <defaults>
</compile_context>

<pallas_src>
import functools

import jax
import jax.numpy as jnp
from jax import lax
from jax.experimental import pallas as pl
from jax.experimental.pallas import tpu as pltpu


def _round_up(x, m):
    return ((x + m - 1) // m) * m


def _divisor_tile(dim, want, mult):
    """Largest tile <= want that divides dim and is a multiple of mult.

    `dim` is always a multiple of `mult` by construction (padding), so this
    terminates at `mult` in the worst case.
    """
    t = max(mult, (min(want, dim) // mult) * mult)
    while dim % t:
        t -= mult
    return t


# -----------------------------------------------------------------------------
# Generic tiled projection kernel: y = [leaky_relu](x @ w + b)
# Used for the hoisted LSTM input projections and the output head.
# Inputs x and w are bf16 (no per-tile cast); accumulation is f32.
# -----------------------------------------------------------------------------
def _proj_kernel(x_ref, w_ref, b_ref, o_ref, acc_ref, *, leaky_relu):
    k = pl.program_id(2)

    @pl.when(k == 0)
    def _():
        acc_ref[...] = jnp.zeros_like(acc_ref)

    acc_ref[...] += jnp.dot(x_ref[...], w_ref[...],
                            preferred_element_type=jnp.float32)

    @pl.when(k == pl.num_programs(2) - 1)
    def _():
        y = acc_ref[...] + b_ref[...]
        if leaky_relu:
            y = jnp.where(y > 0, y, 0.01 * y)   # F.leaky_relu default slope
        o_ref[...] = y.astype(o_ref.dtype)


def projection(x, w, b, *, leaky_relu=False, out_dtype=jnp.float32,
               tm=512, tn=256, tk=512):
    """x: [M, K] bf16, w: [K, N] bf16, b: [1, N] f32 -> [M, N] out_dtype."""
    M, K = x.shape
    K2, N = w.shape
    assert K == K2
    tm = _divisor_tile(M, tm, 8)
    tn = _divisor_tile(N, tn, 128)
    tk = _divisor_tile(K, tk, 128)
    kernel = functools.partial(_proj_kernel, leaky_relu=leaky_relu)
    return pl.pallas_call(
        kernel,
        out_shape=jax.ShapeDtypeStruct((M, N), out_dtype),
        grid_spec=pltpu.PrefetchScalarGridSpec(
            num_scalar_prefetch=0,
            grid=(M // tm, N // tn, K // tk),
            in_specs=[
                pl.BlockSpec((tm, tk), lambda i, j, k: (i, k)),
                pl.BlockSpec((tk, tn), lambda i, j, k: (k, j)),
                pl.BlockSpec((1, tn), lambda i, j, k: (0, j)),
            ],
            out_specs=pl.BlockSpec((tm, tn), lambda i, j, k: (i, j)),
            scratch_shapes=[pltpu.VMEM((tm, tn), jnp.float32)],
        ),
        compiler_params=pltpu.CompilerParams(
            dimension_semantics=("parallel", "parallel", "arbitrary")),
    )(x, w, b)


# -----------------------------------------------------------------------------
# LSTM recurrence kernel: only the serial part lives here.
#   gates(t) = gates_x(t) + h(t-1) @ W_hh    (gates_x precomputed, bias folded)
# Gate order follows PyTorch nn.LSTM: (i, f, g, o), each padded to Hp lanes.
# Each grid step processes a (batch-block, TT-time-step) tile; h/c carries are
# f32 VMEM scratch, re-initialized at t_block == 0 for every batch block.
# -----------------------------------------------------------------------------
def _lstm_recurrence_kernel(gx_ref, whh_ref, h_seq_ref, cn_ref, h_sc, c_sc):
    tb = pl.program_id(1)

    @pl.when(tb == 0)
    def _():
        # state=None in the PyTorch forward -> zero-initialized (h0, c0)
        h_sc[...] = jnp.zeros_like(h_sc)
        c_sc[...] = jnp.zeros_like(c_sc)

    tt = gx_ref.shape[0]
    Hp = h_sc.shape[-1]

    def step(s, carry):
        gates = gx_ref[s].astype(jnp.float32) + jnp.dot(
            h_sc[...].astype(jnp.bfloat16), whh_ref[...],
            preferred_element_type=jnp.float32)
        i_g = jax.nn.sigmoid(gates[:, 0 * Hp:1 * Hp])
        f_g = jax.nn.sigmoid(gates[:, 1 * Hp:2 * Hp])
        g_g = jnp.tanh(gates[:, 2 * Hp:3 * Hp])
        o_g = jax.nn.sigmoid(gates[:, 3 * Hp:4 * Hp])
        c_new = f_g * c_sc[...] + i_g * g_g
        h_new = o_g * jnp.tanh(c_new)
        c_sc[...] = c_new
        h_sc[...] = h_new
        h_seq_ref[s] = h_new.astype(h_seq_ref.dtype)
        return carry

    lax.fori_loop(0, tt, step, 0, unroll=True)

    @pl.when(tb == pl.num_programs(1) - 1)
    def _():                                   # final cell state, written once
        cn_ref[...] = c_sc[...]


def lstm_recurrence(gates_x, w_hh, *, tt=16):
    """gates_x: [T, Bp, 4*Hp] bf16 (x@W_ih + bias precomputed); w_hh: [Hp, 4*Hp] bf16.

    Returns (h_seq [T, Bp, Hp] bf16, c_T [Bp, Hp] f32).
    """
    T, Bp, G = gates_x.shape
    Hp = w_hh.shape[0]
    assert G == 4 * Hp

    tt = min(tt, T)
    while T % tt:              # largest divisor of T not exceeding the request
        tt -= 1

    # Split batch into 2 blocks when possible so v7x's two TensorCores share the
    # serial recurrence; single block for small batches (no padding waste).
    nb = 2 if (Bp >= 16 and Bp % 16 == 0) else 1
    bb = Bp // nb

    # Explicit VMEM budget: gx double-buffered, W_hh single-buffered, bf16 h_seq.
    vmem_bytes = (2 * tt * bb * G * gates_x.dtype.itemsize
                  + Hp * G * w_hh.dtype.itemsize
                  + 2 * tt * bb * Hp * 2
                  + 2 * bb * Hp * 4
                  + 2 * bb * Hp * 4)
    vmem_limit = int(min(max(2 * vmem_bytes, 16 * 1024 * 1024),
                         100 * 1024 * 1024))

    # TODO(synk): for very large H on v7x, additionally tile the 4*Hp gate dim of
    # W_hh with an inner 'arbitrary' axis accumulating into a [bb, 4*Hp] scratch.
    out_shapes = (
        jax.ShapeDtypeStruct((T, Bp, Hp), jnp.bfloat16),  # h sequence
        jax.ShapeDtypeStruct((Bp, Hp), jnp.float32),      # c_T
    )
    return pl.pallas_call(
        _lstm_recurrence_kernel,
        out_shape=out_shapes,
        grid_spec=pltpu.PrefetchScalarGridSpec(
            num_scalar_prefetch=0,
            grid=(nb, T // tt),
            in_specs=[
                pl.BlockSpec((tt, bb, G), lambda b, t: (t, b, 0)),
                pl.BlockSpec((Hp, G), lambda b, t: (0, 0),
                             pipeline_mode=pl.Buffered(1)),
            ],
            out_specs=(
                pl.BlockSpec((tt, bb, Hp), lambda b, t: (t, b, 0)),
                pl.BlockSpec((bb, Hp), lambda b, t: (b, 0)),
            ),
            scratch_shapes=[
                pltpu.VMEM((bb, Hp), jnp.float32),  # h carry (f32)
                pltpu.VMEM((bb, Hp), jnp.float32),  # c carry (f32)
            ],
        ),
        compiler_params=pltpu.CompilerParams(
            dimension_semantics=("parallel", "arbitrary"),
            vmem_limit_bytes=vmem_limit),
    )(gates_x, w_hh)


# -----------------------------------------------------------------------------
# Parameter construction (deterministic, stands in for the loaded checkpoint).
# Weights are generated at the "real" sizes, then zero-padded to lane/sublane
# multiples (gate blocks padded per-gate) and cast to bf16 for the dots.
# -----------------------------------------------------------------------------
def _pad_to(a, shape):
    out = jnp.zeros(shape, a.dtype)
    return out.at[tuple(slice(0, s) for s in a.shape)].set(a)


def _pad_gate_dim(w, H, Hp):
    """[..., 4H] packed (i,f,g,o) -> [..., 4*Hp], each gate block zero-padded."""
    parts = [_pad_to(w[..., g * H:(g + 1) * H], w.shape[:-1] + (Hp,))
             for g in range(4)]
    return jnp.concatenate(parts, axis=-1)


def init_params(key, len_vocab, emb_dim, hidden_units, layers):
    LANE = 128
    Ep = _round_up(emb_dim, LANE)
    Hp = _round_up(hidden_units, LANE)
    Vp = _round_up(len_vocab, LANE)

    keys = jax.random.split(key, 3 + layers)
    scale = 0.1
    params = {"dims": dict(E=emb_dim, H=hidden_units, V=len_vocab,
                           Ep=Ep, Hp=Hp, Vp=Vp)}

    emb = scale * jax.random.normal(keys[0], (len_vocab, emb_dim), jnp.float32)
    params["embedding"] = _pad_to(emb, (len_vocab, Ep)).astype(jnp.bfloat16)

    lstm = []
    for l in range(layers):
        in_dim = emb_dim if l == 0 else hidden_units
        in_pad = Ep if l == 0 else Hp
        k0, k1, k2, k3 = jax.random.split(keys[1 + l], 4)
        w_ih_t = scale * jax.random.normal(k0, (in_dim, 4 * hidden_units), jnp.float32)
        w_hh_t = scale * jax.random.normal(k1, (hidden_units, 4 * hidden_units), jnp.float32)
        # PyTorch has b_ih + b_hh; fold into one bias, then fold into gates_x.
        b = (scale * jax.random.normal(k2, (1, 4 * hidden_units), jnp.float32)
             + scale * jax.random.normal(k3, (1, 4 * hidden_units), jnp.float32))
        lstm.append({
            "w_ih_t": _pad_to(_pad_gate_dim(w_ih_t, hidden_units, Hp),
                              (in_pad, 4 * Hp)).astype(jnp.bfloat16),
            "w_hh_t": _pad_to(_pad_gate_dim(w_hh_t, hidden_units, Hp),
                              (Hp, 4 * Hp)).astype(jnp.bfloat16),
            "b": _pad_gate_dim(b, hidden_units, Hp),          # [1, 4*Hp] f32
        })
    params["lstm"] = lstm

    w_out_t = scale * jax.random.normal(keys[-2], (hidden_units, len_vocab), jnp.float32)
    b_out = scale * jax.random.normal(keys[-1], (1, len_vocab), jnp.float32)
    params["w_out_t"] = _pad_to(w_out_t, (Hp, Vp)).astype(jnp.bfloat16)
    params["b_out"] = _pad_to(b_out, (1, Vp))
    return params


# -----------------------------------------------------------------------------
# Full forward: mirrors Network.forward(x, state=None)
# -----------------------------------------------------------------------------
def network_forward(params, token_ids):
    """token_ids: int32 [B, T]. Returns (logits [B, T, V], (h_n, c_n))."""
    d = params["dims"]
    B, T = token_ids.shape
    Bp = _round_up(max(B, 8), 8)

    # Embedding lookup (frozen table, bf16) — gather is glue, kept in plain JAX.
    # Gather straight into time-major, batch-padded layout (no activation transpose).
    tokens_tm = jnp.zeros((T, Bp), token_ids.dtype).at[:, :B].set(token_ids.T)
    x = params["embedding"][tokens_tm]                       # [T, Bp, Ep] bf16

    h_finals, c_finals = [], []
    for layer_params in params["lstm"]:
        K = x.shape[-1]
        # Hoisted input projection (bias folded), off the serial critical path.
        gates_x = projection(x.reshape(T * Bp, K),
                             layer_params["w_ih_t"], layer_params["b"],
                             out_dtype=jnp.bfloat16)
        gates_x = gates_x.reshape(T, Bp, 4 * d["Hp"])
        x, c_n = lstm_recurrence(gates_x, layer_params["w_hh_t"])
        h_finals.append(x[-1, :B, :d["H"]].astype(jnp.float32))
        c_finals.append(c_n[:B, :d["H"]])
    # TODO(synk): nn.LSTM inter-layer dropout is stochastic (train-mode only);
    # eval-mode (no-dropout) semantics are implemented here.

    # Output head: one flattened matmul fused with bias + leaky_relu.
    y = projection(x.reshape(T * Bp, d["Hp"]), params["w_out_t"],
                   params["b_out"], leaky_relu=True, out_dtype=jnp.float32)
    y = y.reshape(T, Bp, d["Vp"])[:, :B, :d["V"]]
    logits = jnp.transpose(y, (1, 0, 2))                     # [B, T, V] (small)
    rnn_state = (jnp.stack(h_finals, axis=0), jnp.stack(c_finals, axis=0))
    return logits, rnn_state


if __name__ == "__main__":
    # Small shapes consistent with the module's forward.
    LEN_VOCAB, EMB_DIM, HIDDEN, LAYERS = 32, 16, 32, 2
    B, T = 2, 8

    key = jax.random.PRNGKey(0)
    k_params, k_tokens = jax.random.split(key)
    params = init_params(k_params, LEN_VOCAB, EMB_DIM, HIDDEN, LAYERS)
    tokens = jax.random.randint(k_tokens, (B, T), 0, LEN_VOCAB, dtype=jnp.int32)

    fwd = jax.jit(functools.partial(network_forward, params))
    logits, (h_n, c_n) = fwd(tokens)
    jax.block_until_ready((logits, h_n, c_n))

    assert logits.shape == (B, T, LEN_VOCAB)
    assert h_n.shape == (LAYERS, B, HIDDEN)
    assert c_n.shape == (LAYERS, B, HIDDEN)
    print("KERNEL_OK")
</pallas_src>

<mosaic_0001>
module attributes {stable_mosaic.version = 11 : i64} {
  func.func @_proj_kernel(%arg0: i32, %arg1: i32, %arg2: i32, %arg3: memref<64x128xbf16, #tpu.memory_space<vmem>>, %arg4: memref<128x256xbf16, #tpu.memory_space<vmem>>, %arg5: memref<1x256xf32, #tpu.memory_space<vmem>>, %arg6: memref<64x256xbf16, #tpu.memory_space<vmem>>, %arg7: memref<64x256xf32, #tpu.memory_space<vmem>>) attributes {dimension_semantics = [#tpu.dimension_semantics<parallel>, #tpu.dimension_semantics<parallel>, #tpu.dimension_semantics<arbitrary>], iteration_bounds = array<i64: 1, 2, 1>, scalar_prefetch = 0 : i64, scratch_operands = 1 : i64, tpu.core_type = #tpu.core_type<tc>, window_params = [{transform_indices = @transform_0, window_bounds = array<i64: 64, 128>}, {transform_indices = @transform_1, window_bounds = array<i64: 128, 256>}, {transform_indices = @transform_2, window_bounds = array<i64: 1, 256>}, {transform_indices = @transform_3, window_bounds = array<i64: 64, 256>}]} {
    %c0_i32 = arith.constant 0 : i32
    %0 = arith.cmpi eq, %arg2, %c0_i32 : i32
    %1 = arith.extui %0 : i1 to i32
    %c0_i32_0 = arith.constant 0 : i32
    %2 = arith.cmpi ne, %1, %c0_i32_0 : i32
    scf.if %2 {
      %cst_10 = arith.constant 0.000000e+00 : f32
      %12 = vector.broadcast %cst_10 : f32 to vector<64x256xf32>
      %c0_11 = arith.constant 0 : index
      %c0_12 = arith.constant 0 : index
      %13 = vector.load %arg7[%c0_11, %c0_12] : memref<64x256xf32, #tpu.memory_space<vmem>>, vector<64x256xf32>
      tpu.vector_store %arg7[%c0_11, %c0_12], %12 {strides = array<i32>} : memref<64x256xf32, #tpu.memory_space<vmem>>, vector<64x256xf32>,
    } else {
    }
    %c0 = arith.constant 0 : index
    %c0_1 = arith.constant 0 : index
    %3 = vector.load %arg7[%c0, %c0_1] : memref<64x256xf32, #tpu.memory_space<vmem>>, vector<64x256xf32>
    %c0_2 = arith.constant 0 : index
    %c0_3 = arith.constant 0 : index
    %4 = vector.load %arg3[%c0_2, %c0_3] : memref<64x128xbf16, #tpu.memory_space<vmem>>, vector<64x128xbf16>
    %c0_4 = arith.constant 0 : index
    %c0_5 = arith.constant 0 : index
    %5 = vector.load %arg4[%c0_4, %c0_5] : memref<128x256xbf16, #tpu.memory_space<vmem>>, vector<128x256xbf16>
    %cst = arith.constant dense<0.000000e+00> : vector<64x256xf32>
    %6 = tpu.matmul %4, %5, %cst {dimension_numbers = #tpu.dot_dimension_numbers<[1], [0], [0], [1], [0, 0, 1, 1], [], []>} : vector<64x128xbf16>, vector<128x256xbf16>, vector<64x256xf32> -> vector<64x256xf32>
    %7 = arith.addf %3, %6 : vector<64x256xf32>
    %c0_6 = arith.constant 0 : index
    %c0_7 = arith.constant 0 : index
    %8 = vector.load %arg7[%c0_6, %c0_7] : memref<64x256xf32, #tpu.memory_space<vmem>>, vector<64x256xf32>
    tpu.vector_store %arg7[%c0_6, %c0_7], %7 {strides = array<i32>} : memref<64x256xf32, #tpu.memory_space<vmem>>, vector<64x256xf32>,
    %c0_i32_8 = arith.constant 0 : i32
    %9 = arith.cmpi eq, %arg2, %c0_i32_8 : i32
    %10 = arith.extui %9 : i1 to i32
    %c0_i32_9 = arith.constant 0 : i32
    %11 = arith.cmpi ne, %10, %c0_i32_9 : i32
    scf.if %11 {
      %c0_10 = arith.constant 0 : index
      %c0_11 = arith.constant 0 : index
      %12 = vector.load %arg7[%c0_10, %c0_11] : memref<64x256xf32, #tpu.memory_space<vmem>>, vector<64x256xf32>
      %c0_12 = arith.constant 0 : index
      %c0_13 = arith.constant 0 : index
      %13 = vector.load %arg5[%c0_12, %c0_13] : memref<1x256xf32, #tpu.memory_space<vmem>>, vector<1x256xf32>
      %14 = vector.broadcast %13 : vector<1x256xf32> to vector<64x256xf32>
      %15 = arith.addf %12, %14 : vector<64x256xf32>
      %16 = arith.truncf %15 : vector<64x256xf32> to vector<64x256xbf16>
      %c0_14 = arith.constant 0 : index
      %c0_15 = arith.constant 0 : index
      %17 = vector.load %arg6[%c0_14, %c0_15] : memref<64x256xbf16, #tpu.memory_space<vmem>>, vector<64x256xbf16>
      tpu.vector_store %arg6[%c0_14, %c0_15], %16 {strides = array<i32>} : memref<64x256xbf16, #tpu.memory_space<vmem>>, vector<64x256xbf16>,
    } else {
    }
    return
  }
  func.func @transform_0(%arg0: i32, %arg1: i32, %arg2: i32) -> (i32, i32) {
    %c0_i32 = arith.constant 0 : i32
    return %arg0, %arg2 : i32, i32
  }
  func.func @transform_1(%arg0: i32, %arg1: i32, %arg2: i32) -> (i32, i32) {
    %c0_i32 = arith.constant 0 : i32
    return %arg2, %arg1 : i32, i32
  }
  func.func @transform_2(%arg0: i32, %arg1: i32, %arg2: i32) -> (i32, i32) {
    %c0_i32 = arith.constant 0 : i32
    %c0_i32_0 = arith.constant 0 : i32
    return %c0_i32, %arg1 : i32, i32
  }
  func.func @transform_3(%arg0: i32, %arg1: i32, %arg2: i32) -> (i32, i32) {
    %c0_i32 = arith.constant 0 : i32
    return %arg0, %arg1 : i32, i32
  }
}

module attributes {stable_mosaic.version = 11 : i64} {
  func.func @_proj_kernel(%arg0: i32, %arg1: i32, %arg2: i32, %arg3: memref<64x128xbf16, #tpu.memory_space<vmem>>, %arg4: memref<128x128xbf16, #tpu.memory_space<vmem>>, %arg5: memref<1x128xf32, #tpu.memory_space<vmem>>, %arg6: memref<64x128xf32, #tpu.memory_space<vmem>>, %arg7: memref<64x128xf32, #tpu.memory_space<vmem>>) attributes {dimension_semantics = [#tpu.dimension_semantics<parallel>, #tpu.dimension_semantics<parallel>, #tpu.dimension_semantics<arbitrary>], iteration_bounds = array<i64: 1, 1, 1>, scalar_prefetch = 0 : i64, scratch_operands = 1 : i64, tpu.core_type = #tpu.core_type<tc>, window_params = [{transform_indices = @transform_0, window_bounds = array<i64: 64, 128>}, {transform_indices = @transform_1, window_bounds = array<i64: 128, 128>}, {transform_indices = @transform_2, window_bounds = array<i64: 1, 128>}, {transform_indices = @transform_3, window_bounds = array<i64: 64, 128>}]} {
    %c0_i32 = arith.constant 0 : i32
    %0 = arith.cmpi eq, %arg2, %c0_i32 : i32
    %1 = arith.extui %0 : i1 to i32
    %c0_i32_0 = arith.constant 0 : i32
    %2 = arith.cmpi ne, %1, %c0_i32_0 : i32
    scf.if %2 {
      %cst_10 = arith.constant 0.000000e+00 : f32
      %12 = vector.broadcast %cst_10 : f32 to vector<64x128xf32>
      %c0_11 = arith.constant 0 : index
      %c0_12 = arith.constant 0 : index
      %13 = vector.load %arg7[%c0_11, %c0_12] : memref<64x128xf32, #tpu.memory_space<vmem>>, vector<64x128xf32>
      tpu.vector_store %arg7[%c0_11, %c0_12], %12 {strides = array<i32>} : memref<64x128xf32, #tpu.memory_space<vmem>>, vector<64x128xf32>,
    } else {
    }
    %c0 = arith.constant 0 : index
    %c0_1 = arith.constant 0 : index
    %3 = vector.load %arg7[%c0, %c0_1] : memref<64x128xf32, #tpu.memory_space<vmem>>, vector<64x128xf32>
    %c0_2 = arith.constant 0 : index
    %c0_3 = arith.constant 0 : index
    %4 = vector.load %arg3[%c0_2, %c0_3] : memref<64x128xbf16, #tpu.memory_space<vmem>>, vector<64x128xbf16>
    %c0_4 = arith.constant 0 : index
    %c0_5 = arith.constant 0 : index
    %5 = vector.load %arg4[%c0_4, %c0_5] : memref<128x128xbf16, #tpu.memory_space<vmem>>, vector<128x128xbf16>
    %cst = arith.constant dense<0.000000e+00> : vector<64x128xf32>
    %6 = tpu.matmul %4, %5, %cst {dimension_numbers = #tpu.dot_dimension_numbers<[1], [0], [0], [1], [0, 0, 1, 1], [], []>} : vector<64x128xbf16>, vector<128x128xbf16>, vector<64x128xf32> -> vector<64x128xf32>
    %7 = arith.addf %3, %6 : vector<64x128xf32>
    %c0_6 = arith.constant 0 : index
    %c0_7 = arith.constant 0 : index
    %8 = vector.load %arg7[%c0_6, %c0_7] : memref<64x128xf32, #tpu.memory_space<vmem>>, vector<64x128xf32>
    tpu.vector_store %arg7[%c0_6, %c0_7], %7 {strides = array<i32>} : memref<64x128xf32, #tpu.memory_space<vmem>>, vector<64x128xf32>,
    %c0_i32_8 = arith.constant 0 : i32
    %9 = arith.cmpi eq, %arg2, %c0_i32_8 : i32
    %10 = arith.extui %9 : i1 to i32
    %c0_i32_9 = arith.constant 0 : i32
    %11 = arith.cmpi ne, %10, %c0_i32_9 : i32
    scf.if %11 {
      %c0_10 = arith.constant 0 : index
      %c0_11 = arith.constant 0 : index
      %12 = vector.load %arg7[%c0_10, %c0_11] : memref<64x128xf32, #tpu.memory_space<vmem>>, vector<64x128xf32>
      %c0_12 = arith.constant 0 : index
      %c0_13 = arith.constant 0 : index
      %13 = vector.load %arg5[%c0_12, %c0_13] : memref<1x128xf32, #tpu.memory_space<vmem>>, vector<1x128xf32>
      %14 = vector.broadcast %13 : vector<1x128xf32> to vector<64x128xf32>
      %15 = arith.addf %12, %14 : vector<64x128xf32>
      %cst_14 = arith.constant 0.000000e+00 : f32
      %16 = vector.broadcast %cst_14 : f32 to vector<64x128xf32>
      %17 = arith.cmpf ogt, %15, %16 : vector<64x128xf32>
      %cst_15 = arith.constant 0.00999999977 : f32
      %18 = vector.broadcast %cst_15 : f32 to vector<64x128xf32>
      %19 = arith.mulf %18, %15 : vector<64x128xf32>
      %20 = arith.select %17, %15, %19 : vector<64x128xi1>, vector<64x128xf32>
      %c0_16 = arith.constant 0 : index
      %c0_17 = arith.constant 0 : index
      %21 = vector.load %arg6[%c0_16, %c0_17] : memref<64x128xf32, #tpu.memory_space<vmem>>, vector<64x128xf32>
      tpu.vector_store %arg6[%c0_16, %c0_17], %20 {strides = array<i32>} : memref<64x128xf32, #tpu.memory_space<vmem>>, vector<64x128xf32>,
    } else {
    }
    return
  }
  func.func @transform_0(%arg0: i32, %arg1: i32, %arg2: i32) -> (i32, i32) {
    %c0_i32 = arith.constant 0 : i32
    return %arg0, %arg2 : i32, i32
  }
  func.func @transform_1(%arg0: i32, %arg1: i32, %arg2: i32) -> (i32, i32) {
    %c0_i32 = arith.constant 0 : i32
    return %arg2, %arg1 : i32, i32
  }
  func.func @transform_2(%arg0: i32, %arg1: i32, %arg2: i32) -> (i32, i32) {
    %c0_i32 = arith.constant 0 : i32
    %c0_i32_0 = arith.constant 0 : i32
    return %c0_i32, %arg1 : i32, i32
  }
  func.func @transform_3(%arg0: i32, %arg1: i32, %arg2: i32) -> (i32, i32) {
    %c0_i32 = arith.constant 0 : i32
    return %arg0, %arg1 : i32, i32
  }
}

module attributes {stable_mosaic.version = 11 : i64} {
  func.func @_lstm_recurrence_kernel(%arg0: i32, %arg1: i32, %arg2: memref<8x8x512xbf16, #tpu.memory_space<vmem>>, %arg3: memref<128x512xbf16, #tpu.memory_space<vmem>>, %arg4: memref<8x8x128xbf16, #tpu.memory_space<vmem>>, %arg5: memref<8x128xf32, #tpu.memory_space<vmem>>, %arg6: memref<8x128xf32, #tpu.memory_space<vmem>>, %arg7: memref<8x128xf32, #tpu.memory_space<vmem>>) attributes {dimension_semantics = [#tpu.dimension_semantics<parallel>, #tpu.dimension_semantics<arbitrary>], iteration_bounds = array<i64: 1, 1>, scalar_prefetch = 0 : i64, scratch_operands = 2 : i64, tpu.core_type = #tpu.core_type<tc>, window_params = [{transform_indices = @transform_0, window_bounds = array<i64: 8, 8, 512>}, {pipeline_mode = #tpu.pipeline_mode<synchronous>, transform_indices = @transform_1, window_bounds = array<i64: 128, 512>}, {transform_indices = @transform_2, window_bounds = array<i64: 8, 8, 128>}, {transform_indices = @transform_3, window_bounds = array<i64: 8, 128>}]} {
    %c0_i32 = arith.constant 0 : i32
    %0 = arith.cmpi eq, %arg1, %c0_i32 : i32
    %1 = arith.extui %0 : i1 to i32
    %c0_i32_0 = arith.constant 0 : i32
    %2 = arith.cmpi ne, %1, %c0_i32_0 : i32
    scf.if %2 {
      %cst_146 = arith.constant 0.000000e+00 : f32
      %342 = vector.broadcast %cst_146 : f32 to vector<8x128xf32>
      %c0_147 = arith.constant 0 : index
      %c0_148 = arith.constant 0 : index
      %343 = vector.load %arg6[%c0_147, %c0_148] : memref<8x128xf32, #tpu.memory_space<vmem>>, vector<8x128xf32>
      tpu.vector_store %arg6[%c0_147, %c0_148], %342 {strides = array<i32>} : memref<8x128xf32, #tpu.memory_space<vmem>>, vector<8x128xf32>,
      %cst_149 = arith.constant 0.000000e+00 : f32
      %344 = vector.broadcast %cst_149 : f32 to vector<8x128xf32>
      %c0_150 = arith.constant 0 : index
      %c0_151 = arith.constant 0 : index
      %345 = vector.load %arg7[%c0_150, %c0_151] : memref<8x128xf32, #tpu.memory_space<vmem>>, vector<8x128xf32>
      tpu.vector_store %arg7[%c0_150, %c0_151], %344 {strides = array<i32>} : memref<8x128xf32, #tpu.memory_space<vmem>>, vector<8x128xf32>,
    } else {
    }
    %c0_i32_1 = arith.constant 0 : i32
    %3 = arith.index_cast %c0_i32_1 : i32 to index
    %c0 = arith.constant 0 : index
    %c0_2 = arith.constant 0 : index
    %4 = vector.load %arg2[%3, %c0, %c0_2] : memref<8x8x512xbf16, #tpu.memory_space<vmem>>, vector<1x8x512xbf16>
    %5 = vector.shape_cast %4 : vector<1x8x512xbf16> to vector<8x512xbf16>
    %6 = arith.extf %5 : vector<8x512xbf16> to vector<8x512xf32>
    %c0_3 = arith.constant 0 : index
    %c0_4 = arith.constant 0 : index
    %7 = vector.load %arg6[%c0_3, %c0_4] : memref<8x128xf32, #tpu.memory_space<vmem>>, vector<8x128xf32>
    %8 = arith.truncf %7 : vector<8x128xf32> to vector<8x128xbf16>
    %c0_5 = arith.constant 0 : index
    %c0_6 = arith.constant 0 : index
    %9 = vector.load %arg3[%c0_5, %c0_6] : memref<128x512xbf16, #tpu.memory_space<vmem>>, vector<128x512xbf16>
    %cst = arith.constant dense<0.000000e+00> : vector<8x512xf32>
    %10 = tpu.matmul %8, %9, %cst {dimension_numbers = #tpu.dot_dimension_numbers<[1], [0], [0], [1], [0, 0, 1, 1], [], []>} : vector<8x128xbf16>, vector<128x512xbf16>, vector<8x512xf32> -> vector<8x512xf32>
    %11 = arith.addf %6, %10 : vector<8x512xf32>
    %12 = vector.extract_strided_slice %11 {offsets = [0, 0], sizes = [8, 128], strides = [1, 1]} : vector<8x512xf32> to vector<8x128xf32>
    %13 = arith.negf %12 : vector<8x128xf32>
    %14 = math.exp %13 : vector<8x128xf32>
    %cst_7 = arith.constant 1.000000e+00 : f32
    %15 = vector.broadcast %cst_7 : f32 to vector<8x128xf32>
    %16 = arith.addf %15, %14 : vector<8x128xf32>
    %17 = arith.divf %15, %16 : vector<8x128xf32>
    %18 = vector.extract_strided_slice %11 {offsets = [0, 128], sizes = [8, 128], strides = [1, 1]} : vector<8x512xf32> to vector<8x128xf32>
    %19 = arith.negf %18 : vector<8x128xf32>
    %20 = math.exp %19 : vector<8x128xf32>
    %cst_8 = arith.constant 1.000000e+00 : f32
    %21 = vector.broadcast %cst_8 : f32 to vector<8x128xf32>
    %22 = arith.addf %21, %20 : vector<8x128xf32>
    %23 = arith.divf %21, %22 : vector<8x128xf32>
    %24 = vector.extract_strided_slice %11 {offsets = [0, 256], sizes = [8, 128], strides = [1, 1]} : vector<8x512xf32> to vector<8x128xf32>
    %25 = math.tanh %24 : vector<8x128xf32>
    %26 = vector.extract_strided_slice %11 {offsets = [0, 384], sizes = [8, 128], strides = [1, 1]} : vector<8x512xf32> to vector<8x128xf32>
    %27 = arith.negf %26 : vector<8x128xf32>
    %28 = math.exp %27 : vector<8x128xf32>
    %cst_9 = arith.constant 1.000000e+00 : f32
    %29 = vector.broadcast %cst_9 : f32 to vector<8x128xf32>
    %30 = arith.addf %29, %28 : vector<8x128xf32>
    %31 = arith.divf %29, %30 : vector<8x128xf32>
    %c0_10 = arith.constant 0 : index
    %c0_11 = arith.constant 0 : index
    %32 = vector.load %arg7[%c0_10, %c0_11] : memref<8x128xf32, #tpu.memory_space<vmem>>, vector<8x128xf32>
    %33 = arith.mulf %23, %32 : vector<8x128xf32>
    %34 = arith.mulf %17, %25 : vector<8x128xf32>
    %35 = arith.addf %33, %34 : vector<8x128xf32>
    %36 = math.tanh %35 : vector<8x128xf32>
    %37 = arith.mulf %31, %36 : vector<8x128xf32>
    %c0_12 = arith.constant 0 : index
    %c0_13 = arith.constant 0 : index
    %38 = vector.load %arg7[%c0_12, %c0_13] : memref<8x128xf32, #tpu.memory_space<vmem>>, vector<8x128xf32>
    tpu.vector_store %arg7[%c0_12, %c0_13], %35 {strides = array<i32>} : memref<8x128xf32, #tpu.memory_space<vmem>>, vector<8x128xf32>,
    %c0_14 = arith.constant 0 : index
    %c0_15 = arith.constant 0 : index
    %39 = vector.load %arg6[%c0_14, %c0_15] : memref<8x128xf32, #tpu.memory_space<vmem>>, vector<8x128xf32>
    tpu.vector_store %arg6[%c0_14, %c0_15], %37 {strides = array<i32>} : memref<8x128xf32, #tpu.memory_space<vmem>>, vector<8x128xf32>,
    %40 = arith.truncf %37 : vector<8x128xf32> to vector<8x128xbf16>
    %41 = arith.index_cast %c0_i32_1 : i32 to index
    %c0_16 = arith.constant 0 : index
    %c0_17 = arith.constant 0 : index
    %42 = vector.load %arg4[%41, %c0_16, %c0_17] : memref<8x8x128xbf16, #tpu.memory_space<vmem>>, vector<1x8x128xbf16>
    %43 = vector.shape_cast %42 : vector<1x8x128xbf16> to vector<8x128xbf16>
    %44 = vector.shape_cast %40 : vector<8x128xbf16> to vector<1x8x128xbf16>
    tpu.vector_store %arg4[%41, %c0_16, %c0_17], %44 {strides = array<i32>} : memref<8x8x128xbf16, #tpu.memory_space<vmem>>, vector<1x8x128xbf16>,
    %c1_i32 = arith.constant 1 : i32
    %45 = arith.index_cast %c1_i32 : i32 to index
    %c0_18 = arith.constant 0 : index
    %c0_19 = arith.constant 0 : index
    %46 = vector.load %arg2[%45, %c0_18, %c0_19] : memref<8x8x512xbf16, #tpu.memory_space<vmem>>, vector<1x8x512xbf16>
    %47 = vector.shape_cast %46 : vector<1x8x512xbf16> to vector<8x512xbf16>
    %48 = arith.extf %47 : vector<8x512xbf16> to vector<8x512xf32>
    %c0_20 = arith.constant 0 : index
    %c0_21 = arith.constant 0 : index
    %49 = vector.load %arg6[%c0_20, %c0_21] : memref<8x128xf32, #tpu.memory_space<vmem>>, vector<8x128xf32>
    %50 = arith.truncf %49 : vector<8x128xf32> to vector<8x128xbf16>
    %c0_22 = arith.constant 0 : index
    %c0_23 = arith.constant 0 : index
    %51 = vector.load %arg3[%c0_22, %c0_23] : memref<128x512xbf16, #tpu.memory_space<vmem>>, vector<128x512xbf16>
    %cst_24 = arith.constant dense<0.000000e+00> : vector<8x512xf32>
    %52 = tpu.matmul %50, %51, %cst_24 {dimension_numbers = #tpu.dot_dimension_numbers<[1], [0], [0], [1], [0, 0, 1, 1], [], []>} : vector<8x128xbf16>, vector<128x512xbf16>, vector<8x512xf32> -> vector<8x512xf32>
    %53 = arith.addf %48, %52 : vector<8x512xf32>
    %54 = vector.extract_strided_slice %53 {offsets = [0, 0], sizes = [8, 128], strides = [1, 1]} : vector<8x512xf32> to vector<8x128xf32>
    %55 = arith.negf %54 : vector<8x128xf32>
    %56 = math.exp %55 : vector<8x128xf32>
    %cst_25 = arith.constant 1.000000e+00 : f32
    %57 = vector.broadcast %cst_25 : f32 to vector<8x128xf32>
    %58 = arith.addf %57, %56 : vector<8x128xf32>
    %59 = arith.divf %57, %58 : vector<8x128xf32>
    %60 = vector.extract_strided_slice %53 {offsets = [0, 128], sizes = [8, 128], strides = [1, 1]} : vector<8x512xf32> to vector<8x128xf32>
    %61 = arith.negf %60 : vector<8x128xf32>
    %62 = math.exp %61 : vector<8x128xf32>
    %cst_26 = arith.constant 1.000000e+00 : f32
    %63 = vector.broadcast %cst_26 : f32 to vector<8x128xf32>
    %64 = arith.addf %63, %62 : vector<8x128xf32>
    %65 = arith.divf %63, %64 : vector<8x128xf32>
    %66 = vector.extract_strided_slice %53 {offsets = [0, 256], sizes = [8, 128], strides = [1, 1]} : vector<8x512xf32> to vector<8x128xf32>
    %67 = math.tanh %66 : vector<8x128xf32>
    %68 = vector.extract_strided_slice %53 {offsets = [0, 384], sizes = [8, 128], strides = [1, 1]} : vector<8x512xf32> to vector<8x128xf32>
    %69 = arith.negf %68 : vector<8x128xf32>
    %70 = math.exp %69 : vector<8x128xf32>
    %cst_27 = arith.constant 1.000000e+00 : f32
    %71 = vector.broadcast %cst_27 : f32 to vector<8x128xf32>
    %72 = arith.addf %71, %70 : vector<8x128xf32>
    %73 = arith.divf %71, %72 : vector<8x128xf32>
    %c0_28 = arith.constant 0 : index
    %c0_29 = arith.constant 0 : index
    %74 = vector.load %arg7[%c0_28, %c0_29] : memref<8x128xf32, #tpu.memory_space<vmem>>, vector<8x128xf32>
    %75 = arith.mulf %65, %74 : vector<8x128xf32>
    %76 = arith.mulf %59, %67 : vector<8x128xf32>
    %77 = arith.addf %75, %76 : vector<8x128xf32>
    %78 = math.tanh %77 : vector<8x128xf32>
    %79 = arith.mulf %73, %78 : vector<8x128xf32>
    %c0_30 = arith.constant 0 : index
    %c0_31 = arith.constant 0 : index
    %80 = vector.load %arg7[%c0_30, %c0_31] : memref<8x128xf32, #tpu.memory_space<vmem>>, vector<8x128xf32>
    tpu.vector_store %arg7[%c0_30, %c0_31], %77 {strides = array<i32>} : memref<8x128xf32, #tpu.memory_space<vmem>>, vector<8x128xf32>,
    %c0_32 = arith.constant 0 : index
    %c0_33 = arith.constant 0 : index
    %81 = vector.load %arg6[%c0_32, %c0_33] : memref<8x128xf32, #tpu.memory_space<vmem>>, vector<8x128xf32>
    tpu.vector_store %arg6[%c0_32, %c0_33], %79 {strides = array<i32>} : memref<8x128xf32, #tpu.memory_space<vmem>>, vector<8x128xf32>,
    %82 = arith.truncf %79 : vector<8x128xf32> to vector<8x128xbf16>
    %83 = arith.index_cast %c1_i32 : i32 to index
    %c0_34 = arith.constant 0 : index
    %c0_35 = arith.constant 0 : index
    %84 = vector.load %arg4[%83, %c0_34, %c0_35] : memref<8x8x128xbf16, #tpu.memory_space<vmem>>, vector<1x8x128xbf16>
    %85 = vector.shape_cast %84 : vector<1x8x128xbf16> to vector<8x128xbf16>
    %86 = vector.shape_cast %82 : vector<8x128xbf16> to vector<1x8x128xbf16>
    tpu.vector_store %arg4[%83, %c0_34, %c0_35], %86 {strides = array<i32>} : memref<8x8x128xbf16, #tpu.memory_space<vmem>>, vector<1x8x128xbf16>,
    %c2_i32 = arith.constant 2 : i32
    %87 = arith.index_cast %c2_i32 : i32 to index
    %c0_36 = arith.constant 0 : index
    %c0_37 = arith.constant 0 : index
    %88 = vector.load %arg2[%87, %c0_36, %c0_37] : memref<8x8x512xbf16, #tpu.memory_space<vmem>>, vector<1x8x512xbf16>
    %89 = vector.shape_cast %88 : vector<1x8x512xbf16> to vector<8x512xbf16>
    %90 = arith.extf %89 : vector<8x512xbf16> to vector<8x512xf32>
    %c0_38 = arith.constant 0 : index
    %c0_39 = arith.constant 0 : index
    %91 = vector.load %arg6[%c0_38, %c0_39] : memref<8x128xf32, #tpu.memory_space<vmem>>, vector<8x128xf32>
    %92 = arith.truncf %91 : vector<8x128xf32> to vector<8x128xbf16>
    %c0_40 = arith.constant 0 : index
    %c0_41 = arith.constant 0 : index
    %93 = vector.load %arg3[%c0_40, %c0_41] : memref<128x512xbf16, #tpu.memory_space<vmem>>, vector<128x512xbf16>
    %cst_42 = arith.constant dense<0.000000e+00> : vector<8x512xf32>
    %94 = tpu.matmul %92, %93, %cst_42 {dimension_numbers = #tpu.dot_dimension_numbers<[1], [0], [0], [1], [0, 0, 1, 1], [], []>} : vector<8x128xbf16>, vector<128x512xbf16>, vector<8x512xf32> -> vector<8x512xf32>
    %95 = arith.addf %90, %94 : vector<8x512xf32>
    %96 = vector.extract_strided_slice %95 {offsets = [0, 0], sizes = [8, 128], strides = [1, 1]} : vector<8x512xf32> to vector<8x128xf32>
    %97 = arith.negf %96 : vector<8x128xf32>
    %98 = math.exp %97 : vector<8x128xf32>
    %cst_43 = arith.constant 1.000000e+00 : f32
    %99 = vector.broadcast %cst_43 : f32 to vector<8x128xf32>
    %100 = arith.addf %99, %98 : vector<8x128xf32>
    %101 = arith.divf %99, %100 : vector<8x128xf32>
    %102 = vector.extract_strided_slice %95 {offsets = [0, 128], sizes = [8, 128], strides = [1, 1]} : vector<8x512xf32> to vector<8x128xf32>
    %103 = arith.negf %102 : vector<8x128xf32>
    %104 = math.exp %103 : vector<8x128xf32>
    %cst_44 = arith.constant 1.000000e+00 : f32
    %105 = vector.broadcast %cst_44 : f32 to vector<8x128xf32>
    %106 = arith.addf %105, %104 : vector<8x128xf32>
    %107 = arith.divf %105, %106 : vector<8x128xf32>
    %108 = vector.extract_strided_slice %95 {offsets = [0, 256], sizes = [8, 128], strides = [1, 1]} : vector<8x512xf32> to vector<8x128xf32>
    %109 = math.tanh %108 : vector<8x128xf32>
    %110 = vector.extract_strided_slice %95 {offsets = [0, 384], sizes = [8, 128], strides = [1, 1]} : vector<8x512xf32> to vector<8x128xf32>
    %111 = arith.negf %110 : vector<8x128xf32>
    %112 = math.exp %111 : vector<8x128xf32>
    %cst_45 = arith.constant 1.000000e+00 : f32
    %113 = vector.broadcast %cst_45 : f32 to vector<8x128xf32>
    %114 = arith.addf %113, %112 : vector<8x128xf32>
    %115 = arith.divf %113, %114 : vector<8x128xf32>
    %c0_46 = arith.constant 0 : index
    %c0_47 = arith.constant 0 : index
    %116 = vector.load %arg7[%c0_46, %c0_47] : memref<8x128xf32, #tpu.memory_space<vmem>>, vector<8x128xf32>
    %117 = arith.mulf %107, %116 : vector<8x128xf32>
    %118 = arith.mulf %101, %109 : vector<8x128xf32>
    %119 = arith.addf %117, %118 : vector<8x128xf32>
    %120 = math.tanh %119 : vector<8x128xf32>
    %121 = arith.mulf %115, %120 : vector<8x128xf32>
    %c0_48 = arith.constant 0 : index
    %c0_49 = arith.constant 0 : index
    %122 = vector.load %arg7[%c0_48, %c0_49] : memref<8x128xf32, #tpu.memory_space<vmem>>, vector<8x128xf32>
    tpu.vector_store %arg7[%c0_48, %c0_49], %119 {strides = array<i32>} : memref<8x128xf32, #tpu.memory_space<vmem>>, vector<8x128xf32>,
    %c0_50 = arith.constant 0 : index
    %c0_51 = arith.constant 0 : index
    %123 = vector.load %arg6[%c0_50, %c0_51] : memref<8x128xf32, #tpu.memory_space<vmem>>, vector<8x128xf32>
    tpu.vector_store %arg6[%c0_50, %c0_51], %121 {strides = array<i32>} : memref<8x128xf32, #tpu.memory_space<vmem>>, vector<8x128xf32>,
    %124 = arith.truncf %121 : vector<8x128xf32> to vector<8x128xbf16>
    %125 = arith.index_cast %c2_i32 : i32 to index
    %c0_52 = arith.constant 0 : index
    %c0_53 = arith.constant 0 : index
    %126 = vector.load %arg4[%125, %c0_52, %c0_53] : memref<8x8x128xbf16, #tpu.memory_space<vmem>>, vector<1x8x128xbf16>
    %127 = vector.shape_cast %126 : vector<1x8x128xbf16> to vector<8x128xbf16>
    %128 = vector.shape_cast %124 : vector<8x128xbf16> to vector<1x8x128xbf16>
    tpu.vector_store %arg4[%125, %c0_52, %c0_53], %128 {strides = array<i32>} : memref<8x8x128xbf16, #tpu.memory_space<vmem>>, vector<1x8x128xbf16>,
    %c3_i32 = arith.constant 3 : i32
    %129 = arith.index_cast %c3_i32 : i32 to index
    %c0_54 = arith.constant 0 : index
    %c0_55 = arith.constant 0 : index
    %130 = vector.load %arg2[%129, %c0_54, %c0_55] : memref<8x8x512xbf16, #tpu.memory_space<vmem>>, vector<1x8x512xbf16>
    %131 = vector.shape_cast %130 : vector<1x8x512xbf16> to vector<8x512xbf16>
    %132 = arith.extf %131 : vector<8x512xbf16> to vector<8x512xf32>
    %c0_56 = arith.constant 0 : index
    %c0_57 = arith.constant 0 : index
    %133 = vector.load %arg6[%c0_56, %c0_57] : memref<8x128xf32, #tpu.memory_space<vmem>>, vector<8x128xf32>
    %134 = arith.truncf %133 : vector<8x128xf32> to vector<8x128xbf16>
    %c0_58 = arith.constant 0 : index
    %c0_59 = arith.constant 0 : index
    %135 = vector.load %arg3[%c0_58, %c0_59] : memref<128x512xbf16, #tpu.memory_space<vmem>>, vector<128x512xbf16>
    %cst_60 = arith.constant dense<0.000000e+00> : vector<8x512xf32>
    %136 = tpu.matmul %134, %135, %cst_60 {dimension_numbers = #tpu.dot_dimension_numbers<[1], [0], [0], [1], [0, 0, 1, 1], [], []>} : vector<8x128xbf16>, vector<128x512xbf16>, vector<8x512xf32> -> vector<8x512xf32>
    %137 = arith.addf %132, %136 : vector<8x512xf32>
    %138 = vector.extract_strided_slice %137 {offsets = [0, 0], sizes = [8, 128], strides = [1, 1]} : vector<8x512xf32> to vector<8x128xf32>
    %139 = arith.negf %138 : vector<8x128xf32>
    %140 = math.exp %139 : vector<8x128xf32>
    %cst_61 = arith.constant 1.000000e+00 : f32
    %141 = vector.broadcast %cst_61 : f32 to vector<8x128xf32>
    %142 = arith.addf %141, %140 : vector<8x128xf32>
    %143 = arith.divf %141, %142 : vector<8x128xf32>
    %144 = vector.extract_strided_slice %137 {offsets = [0, 128], sizes = [8, 128], strides = [1, 1]} : vector<8x512xf32> to vector<8x128xf32>
    %145 = arith.negf %144 : vector<8x128xf32>
    %146 = math.exp %145 : vector<8x128xf32>
    %cst_62 = arith.constant 1.000000e+00 : f32
    %147 = vector.broadcast %cst_62 : f32 to vector<8x128xf32>
    %148 = arith.addf %147, %146 : vector<8x128xf32>
    %149 = arith.divf %147, %148 : vector<8x128xf32>
    %150 = vector.extract_strided_slice %137 {offsets = [0, 256], sizes = [8, 128], strides = [1, 1]} : vector<8x512xf32> to vector<8x128xf32>
    %151 = math.tanh %150 : vector<8x128xf32>
    %152 = vector.extract_strided_slice %137 {offsets = [0, 384], sizes = [8, 128], strides = [1, 1]} : vector<8x512xf32> to vector<8x128xf32>
    %153 = arith.negf %152 : vector<8x128xf32>
    %154 = math.exp %153 : vector<8x128xf32>
    %cst_63 = arith.constant 1.000000e+00 : f32
    %155 = vector.broadcast %cst_63 : f32 to vector<8x128xf32>
    %156 = arith.addf %155, %154 : vector<8x128xf32>
    %157 = arith.divf %155, %156 : vector<8x128xf32>
    %c0_64 = arith.constant 0 : index
    %c0_65 = arith.constant 0 : index
    %158 = vector.load %arg7[%c0_64, %c0_65] : memref<8x128xf32, #tpu.memory_space<vmem>>, vector<8x128xf32>
    %159 = arith.mulf %149, %158 : vector<8x128xf32>
    %160 = arith.mulf %143, %151 : vector<8x128xf32>
    %161 = arith.addf %159, %160 : vector<8x128xf32>
    %162 = math.tanh %161 : vector<8x128xf32>
    %163 = arith.mulf %157, %162 : vector<8x128xf32>
    %c0_66 = arith.constant 0 : index
    %c0_67 = arith.constant 0 : index
    %164 = vector.load %arg7[%c0_66, %c0_67] : memref<8x128xf32, #tpu.memory_space<vmem>>, vector<8x128xf32>
    tpu.vector_store %arg7[%c0_66, %c0_67], %161 {strides = array<i32>} : memref<8x128xf32, #tpu.memory_space<vmem>>, vector<8x128xf32>,
    %c0_68 = arith.constant 0 : index
    %c0_69 = arith.constant 0 : index
    %165 = vector.load %arg6[%c0_68, %c0_69] : memref<8x128xf32, #tpu.memory_space<vmem>>, vector<8x128xf32>
    tpu.vector_store %arg6[%c0_68, %c0_69], %163 {strides = array<i32>} : memref<8x128xf32, #tpu.memory_space<vmem>>, vector<8x128xf32>,
    %166 = arith.truncf %163 : vector<8x128xf32> to vector<8x128xbf16>
    %167 = arith.index_cast %c3_i32 : i32 to index
    %c0_70 = arith.constant 0 : index
    %c0_71 = arith.constant 0 : index
    %168 = vector.load %arg4[%167, %c0_70, %c0_71] : memref<8x8x128xbf16, #tpu.memory_space<vmem>>, vector<1x8x128xbf16>
    %169 = vector.shape_cast %168 : vector<1x8x128xbf16> to vector<8x128xbf16>
    %170 = vector.shape_cast %166 : vector<8x128xbf16> to vector<1x8x128xbf16>
    tpu.vector_store %arg4[%167, %c0_70, %c0_71], %170 {strides = array<i32>} : memref<8x8x128xbf16, #tpu.memory_space<vmem>>, vector<1x8x128xbf16>,
    %c4_i32 = arith.constant 4 : i32
    %171 = arith.index_cast %c4_i32 : i32 to index
    %c0_72 = arith.constant 0 : index
    %c0_73 = arith.constant 0 : index
    %172 = vector.load %arg2[%171, %c0_72, %c0_73] : memref<8x8x512xbf16, #tpu.memory_space<vmem>>, vector<1x8x512xbf16>
    %173 = vector.shape_cast %172 : vector<1x8x512xbf16> to vector<8x512xbf16>
    %174 = arith.extf %173 : vector<8x512xbf16> to vector<8x512xf32>
    %c0_74 = arith.constant 0 : index
    %c0_75 = arith.constant 0 : index
    %175 = vector.load %arg6[%c0_74, %c0_75] : memref<8x128xf32, #tpu.memory_space<vmem>>, vector<8x128xf32>
    %176 = arith.truncf %175 : vector<8x128xf32> to vector<8x128xbf16>
    %c0_76 = arith.constant 0 : index
    %c0_77 = arith.constant 0 : index
    %177 = vector.load %arg3[%c0_76, %c0_77] : memref<128x512xbf16, #tpu.memory_space<vmem>>, vector<128x512xbf16>
    %cst_78 = arith.constant dense<0.000000e+00> : vector<8x512xf32>
    %178 = tpu.matmul %176, %177, %cst_78 {dimension_numbers = #tpu.dot_dimension_numbers<[1], [0], [0], [1], [0, 0, 1, 1], [], []>} : vector<8x128xbf16>, vector<128x512xbf16>, vector<8x512xf32> -> vector<8x512xf32>
    %179 = arith.addf %174, %178 : vector<8x512xf32>
    %180 = vector.extract_strided_slice %179 {offsets = [0, 0], sizes = [8, 128], strides = [1, 1]} : vector<8x512xf32> to vector<8x128xf32>
    %181 = arith.negf %180 : vector<8x128xf32>
    %182 = math.exp %181 : vector<8x128xf32>
    %cst_79 = arith.constant 1.000000e+00 : f32
    %183 = vector.broadcast %cst_79 : f32 to vector<8x128xf32>
    %184 = arith.addf %183, %182 : vector<8x128xf32>
    %185 = arith.divf %183, %184 : vector<8x128xf32>
    %186 = vector.extract_strided_slice %179 {offsets = [0, 128], sizes = [8, 128], strides = [1, 1]} : vector<8x512xf32> to vector<8x128xf32>
    %187 = arith.negf %186 : vector<8x128xf32>
    %188 = math.exp %187 : vector<8x128xf32>
    %cst_80 = arith.constant 1.000000e+00 : f32
    %189 = vector.broadcast %cst_80 : f32 to vector<8x128xf32>
    %190 = arith.addf %189, %188 : vector<8x128xf32>
    %191 = arith.divf %189, %190 : vector<8x128xf32>
    %192 = vector.extract_strided_slice %179 {offsets = [0, 256], sizes = [8, 128], strides = [1, 1]} : vector<8x512xf32> to vector<8x128xf32>
    %193 = math.tanh %192 : vector<8x128xf32>
    %194 = vector.extract_strided_slice %179 {offsets = [0, 384], sizes = [8, 128], strides = [1, 1]} : vector<8x512xf32> to vector<8x128xf32>
    %195 = arith.negf %194 : vector<8x128xf32>
    %196 = math.exp %195 : vector<8x128xf32>
    %cst_81 = arith.constant 1.000000e+00 : f32
    %197 = vector.broadcast %cst_81 : f32 to vector<8x128xf32>
    %198 = arith.addf %197, %196 : vector<8x128xf32>
    %199 = arith.divf %197, %198 : vector<8x128xf32>
    %c0_82 = arith.constant 0 : index
    %c0_83 = arith.constant 0 : index
    %200 = vector.load %arg7[%c0_82, %c0_83] : memref<8x128xf32, #tpu.memory_space<vmem>>, vector<8x128xf32>
    %201 = arith.mulf %191, %200 : vector<8x128xf32>
    %202 = arith.mulf %185, %193 : vector<8x128xf32>
    %203 = arith.addf %201, %202 : vector<8x128xf32>
    %204 = math.tanh %203 : vector<8x128xf32>
    %205 = arith.mulf %199, %204 : vector<8x128xf32>
    %c0_84 = arith.constant 0 : index
    %c0_85 = arith.constant 0 : index
    %206 = vector.load %arg7[%c0_84, %c0_85] : memref<8x128xf32, #tpu.memory_space<vmem>>, vector<8x128xf32>
    tpu.vector_store %arg7[%c0_84, %c0_85], %203 {strides = array<i32>} : memref<8x128xf32, #tpu.memory_space<vmem>>, vector<8x128xf32>,
    %c0_86 = arith.constant 0 : index
    %c0_87 = arith.constant 0 : index
    %207 = vector.load %arg6[%c0_86, %c0_87] : memref<8x128xf32, #tpu.memory_space<vmem>>, vector<8x128xf32>
    tpu.vector_store %arg6[%c0_86, %c0_87], %205 {strides = array<i32>} : memref<8x128xf32, #tpu.memory_space<vmem>>, vector<8x128xf32>,
    %208 = arith.truncf %205 : vector<8x128xf32> to vector<8x128xbf16>
    %209 = arith.index_cast %c4_i32 : i32 to index
    %c0_88 = arith.constant 0 : index
    %c0_89 = arith.constant 0 : index
    %210 = vector.load %arg4[%209, %c0_88, %c0_89] : memref<8x8x128xbf16, #tpu.memory_space<vmem>>, vector<1x8x128xbf16>
    %211 = vector.shape_cast %210 : vector<1x8x128xbf16> to vector<8x128xbf16>
    %212 = vector.shape_cast %208 : vector<8x128xbf16> to vector<1x8x128xbf16>
    tpu.vector_store %arg4[%209, %c0_88, %c0_89], %212 {strides = array<i32>} : memref<8x8x128xbf16, #tpu.memory_space<vmem>>, vector<1x8x128xbf16>,
    %c5_i32 = arith.constant 5 : i32
    %213 = arith.index_cast %c5_i32 : i32 to index
    %c0_90 = arith.constant 0 : index
    %c0_91 = arith.constant 0 : index
    %214 = vector.load %arg2[%213, %c0_90, %c0_91] : memref<8x8x512xbf16, #tpu.memory_space<vmem>>, vector<1x8x512xbf16>
    %215 = vector.shape_cast %214 : vector<1x8x512xbf16> to vector<8x512xbf16>
    %216 = arith.extf %215 : vector<8x512xbf16> to vector<8x512xf32>
    %c0_92 = arith.constant 0 : index
    %c0_93 = arith.constant 0 : index
    %217 = vector.load %arg6[%c0_92, %c0_93] : memref<8x128xf32, #tpu.memory_space<vmem>>, vector<8x128xf32>
    %218 = arith.truncf %217 : vector<8x128xf32> to vector<8x128xbf16>
    %c0_94 = arith.constant 0 : index
    %c0_95 = arith.constant 0 : index
    %219 = vector.load %arg3[%c0_94, %c0_95] : memref<128x512xbf16, #tpu.memory_space<vmem>>, vector<128x512xbf16>
    %cst_96 = arith.constant dense<0.000000e+00> : vector<8x512xf32>
    %220 = tpu.matmul %218, %219, %cst_96 {dimension_numbers = #tpu.dot_dimension_numbers<[1], [0], [0], [1], [0, 0, 1, 1], [], []>} : vector<8x128xbf16>, vector<128x512xbf16>, vector<8x512xf32> -> vector<8x512xf32>
    %221 = arith.addf %216, %220 : vector<8x512xf32>
    %222 = vector.extract_strided_slice %221 {offsets = [0, 0], sizes = [8, 128], strides = [1, 1]} : vector<8x512xf32> to vector<8x128xf32>
    %223 = arith.negf %222 : vector<8x128xf32>
    %224 = math.exp %223 : vector<8x128xf32>
    %cst_97 = arith.constant 1.000000e+00 : f32
    %225 = vector.broadcast %cst_97 : f32 to vector<8x128xf32>
    %226 = arith.addf %225, %224 : vector<8x128xf32>
    %227 = arith.divf %225, %226 : vector<8x128xf32>
    %228 = vector.extract_strided_slice %221 {offsets = [0, 128], sizes = [8, 128], strides = [1, 1]} : vector<8x512xf32> to vector<8x128xf32>
    %229 = arith.negf %228 : vector<8x128xf32>
    %230 = math.exp %229 : vector<8x128xf32>
    %cst_98 = arith.constant 1.000000e+00 : f32
    %231 = vector.broadcast %cst_98 : f32 to vector<8x128xf32>
    %232 = arith.addf %231, %230 : vector<8x128xf32>
    %233 = arith.divf %231, %232 : vector<8x128xf32>
    %234 = vector.extract_strided_slice %221 {offsets = [0, 256], sizes = [8, 128], strides = [1, 1]} : vector<8x512xf32> to vector<8x128xf32>
    %235 = math.tanh %234 : vector<8x128xf32>
    %236 = vector.extract_strided_slice %221 {offsets = [0, 384], sizes = [8, 128], strides = [1, 1]} : vector<8x512xf32> to vector<8x128xf32>
    %237 = arith.negf %236 : vector<8x128xf32>
    %238 = math.exp %237 : vector<8x128xf32>
    %cst_99 = arith.constant 1.000000e+00 : f32
    %239 = vector.broadcast %cst_99 : f32 to vector<8x128xf32>
    %240 = arith.addf %239, %238 : vector<8x128xf32>
    %241 = arith.divf %239, %240 : vector<8x128xf32>
    %c0_100 = arith.constant 0 : index
    %c0_101 = arith.constant 0 : index
    %242 = vector.load %arg7[%c0_100, %c0_101] : memref<8x128xf32, #tpu.memory_space<vmem>>, vector<8x128xf32>
    %243 = arith.mulf %233, %242 : vector<8x128xf32>
    %244 = arith.mulf %227, %235 : vector<8x128xf32>
    %245 = arith.addf %243, %244 : vector<8x128xf32>
    %246 = math.tanh %245 : vector<8x128xf32>
    %247 = arith.mulf %241, %246 : vector<8x128xf32>
    %c0_102 = arith.constant 0 : index
    %c0_103 = arith.constant 0 : index
    %248 = vector.load %arg7[%c0_102, %c0_103] : memref<8x128xf32, #tpu.memory_space<vmem>>, vector<8x128xf32>
    tpu.vector_store %arg7[%c0_102, %c0_103], %245 {strides = array<i32>} : memref<8x128xf32, #tpu.memory_space<vmem>>, vector<8x128xf32>,
    %c0_104 = arith.constant 0 : index
    %c0_105 = arith.constant 0 : index
    %249 = vector.load %arg6[%c0_104, %c0_105] : memref<8x128xf32, #tpu.memory_space<vmem>>, vector<8x128xf32>
    tpu.vector_store %arg6[%c0_104, %c0_105], %247 {strides = array<i32>} : memref<8x128xf32, #tpu.memory_space<vmem>>, vector<8x128xf32>,
    %250 = arith.truncf %247 : vector<8x128xf32> to vector<8x128xbf16>
    %251 = arith.index_cast %c5_i32 : i32 to index
    %c0_106 = arith.constant 0 : index
    %c0_107 = arith.constant 0 : index
    %252 = vector.load %arg4[%251, %c0_106, %c0_107] : memref<8x8x128xbf16, #tpu.memory_space<vmem>>, vector<1x8x128xbf16>
    %253 = vector.shape_cast %252 : vector<1x8x128xbf16> to vector<8x128xbf16>
    %254 = vector.shape_cast %250 : vector<8x128xbf16> to vector<1x8x128xbf16>
    tpu.vector_store %arg4[%251, %c0_106, %c0_107], %254 {strides = array<i32>} : memref<8x8x128xbf16, #tpu.memory_space<vmem>>, vector<1x8x128xbf16>,
    %c6_i32 = arith.constant 6 : i32
    %255 = arith.index_cast %c6_i32 : i32 to index
    %c0_108 = arith.constant 0 : index
    %c0_109 = arith.constant 0 : index
    %256 = vector.load %arg2[%255, %c0_108, %c0_109] : memref<8x8x512xbf16, #tpu.memory_space<vmem>>, vector<1x8x512xbf16>
    %257 = vector.shape_cast %256 : vector<1x8x512xbf16> to vector<8x512xbf16>
    %258 = arith.extf %257 : vector<8x512xbf16> to vector<8x512xf32>
    %c0_110 = arith.constant 0 : index
    %c0_111 = arith.constant 0 : index
    %259 = vector.load %arg6[%c0_110, %c0_111] : memref<8x128xf32, #tpu.memory_space<vmem>>, vector<8x128xf32>
    %260 = arith.truncf %259 : vector<8x128xf32> to vector<8x128xbf16>
    %c0_112 = arith.constant 0 : index
    %c0_113 = arith.constant 0 : index
    %261 = vector.load %arg3[%c0_112, %c0_113] : memref<128x512xbf16, #tpu.memory_space<vmem>>, vector<128x512xbf16>
    %cst_114 = arith.constant dense<0.000000e+00> : vector<8x512xf32>
    %262 = tpu.matmul %260, %261, %cst_114 {dimension_numbers = #tpu.dot_dimension_numbers<[1], [0], [0], [1], [0, 0, 1, 1], [], []>} : vector<8x128xbf16>, vector<128x512xbf16>, vector<8x512xf32> -> vector<8x512xf32>
    %263 = arith.addf %258, %262 : vector<8x512xf32>
    %264 = vector.extract_strided_slice %263 {offsets = [0, 0], sizes = [8, 128], strides = [1, 1]} : vector<8x512xf32> to vector<8x128xf32>
    %265 = arith.negf %264 : vector<8x128xf32>
    %266 = math.exp %265 : vector<8x128xf32>
    %cst_115 = arith.constant 1.000000e+00 : f32
    %267 = vector.broadcast %cst_115 : f32 to vector<8x128xf32>
    %268 = arith.addf %267, %266 : vector<8x128xf32>
    %269 = arith.divf %267, %268 : vector<8x128xf32>
    %270 = vector.extract_strided_slice %263 {offsets = [0, 128], sizes = [8, 128], strides = [1, 1]} : vector<8x512xf32> to vector<8x128xf32>
    %271 = arith.negf %270 : vector<8x128xf32>
    %272 = math.exp %271 : vector<8x128xf32>
    %cst_116 = arith.constant 1.000000e+00 : f32
    %273 = vector.broadcast %cst_116 : f32 to vector<8x128xf32>
    %274 = arith.addf %273, %272 : vector<8x128xf32>
    %275 = arith.divf %273, %274 : vector<8x128xf32>
    %276 = vector.extract_strided_slice %263 {offsets = [0, 256], sizes = [8, 128], strides = [1, 1]} : vector<8x512xf32> to vector<8x128xf32>
    %277 = math.tanh %276 : vector<8x128xf32>
    %278 = vector.extract_strided_slice %263 {offsets = [0, 384], sizes = [8, 128], strides = [1, 1]} : vector<8x512xf32> to vector<8x128xf32>
    %279 = arith.negf %278 : vector<8x128xf32>
    %280 = math.exp %279 : vector<8x128xf32>
    %cst_117 = arith.constant 1.000000e+00 : f32
    %281 = vector.broadcast %cst_117 : f32 to vector<8x128xf32>
    %282 = arith.addf %281, %280 : vector<8x128xf32>
    %283 = arith.divf %281, %282 : vector<8x128xf32>
    %c0_118 = arith.constant 0 : index
    %c0_119 = arith.constant 0 : index
    %284 = vector.load %arg7[%c0_118, %c0_119] : memref<8x128xf32, #tpu.memory_space<vmem>>, vector<8x128xf32>
    %285 = arith.mulf %275, %284 : vector<8x128xf32>
    %286 = arith.mulf %269, %277 : vector<8x128xf32>
    %287 = arith.addf %285, %286 : vector<8x128xf32>
    %288 = math.tanh %287 : vector<8x128xf32>
    %289 = arith.mulf %283, %288 : vector<8x128xf32>
    %c0_120 = arith.constant 0 : index
    %c0_121 = arith.constant 0 : index
    %290 = vector.load %arg7[%c0_120, %c0_121] : memref<8x128xf32, #tpu.memory_space<vmem>>, vector<8x128xf32>
    tpu.vector_store %arg7[%c0_120, %c0_121], %287 {strides = array<i32>} : memref<8x128xf32, #tpu.memory_space<vmem>>, vector<8x128xf32>,
    %c0_122 = arith.constant 0 : index
    %c0_123 = arith.constant 0 : index
    %291 = vector.load %arg6[%c0_122, %c0_123] : memref<8x128xf32, #tpu.memory_space<vmem>>, vector<8x128xf32>
    tpu.vector_store %arg6[%c0_122, %c0_123], %289 {strides = array<i32>} : memref<8x128xf32, #tpu.memory_space<vmem>>, vector<8x128xf32>,
    %292 = arith.truncf %289 : vector<8x128xf32> to vector<8x128xbf16>
    %293 = arith.index_cast %c6_i32 : i32 to index
    %c0_124 = arith.constant 0 : index
    %c0_125 = arith.constant 0 : index
    %294 = vector.load %arg4[%293, %c0_124, %c0_125] : memref<8x8x128xbf16, #tpu.memory_space<vmem>>, vector<1x8x128xbf16>
    %295 = vector.shape_cast %294 : vector<1x8x128xbf16> to vector<8x128xbf16>
    %296 = vector.shape_cast %292 : vector<8x128xbf16> to vector<1x8x128xbf16>
    tpu.vector_store %arg4[%293, %c0_124, %c0_125], %296 {strides = array<i32>} : memref<8x8x128xbf16, #tpu.memory_space<vmem>>, vector<1x8x128xbf16>,
    %c7_i32 = arith.constant 7 : i32
    %297 = arith.index_cast %c7_i32 : i32 to index
    %c0_126 = arith.constant 0 : index
    %c0_127 = arith.constant 0 : index
    %298 = vector.load %arg2[%297, %c0_126, %c0_127] : memref<8x8x512xbf16, #tpu.memory_space<vmem>>, vector<1x8x512xbf16>
    %299 = vector.shape_cast %298 : vector<1x8x512xbf16> to vector<8x512xbf16>
    %300 = arith.extf %299 : vector<8x512xbf16> to vector<8x512xf32>
    %c0_128 = arith.constant 0 : index
    %c0_129 = arith.constant 0 : index
    %301 = vector.load %arg6[%c0_128, %c0_129] : memref<8x128xf32, #tpu.memory_space<vmem>>, vector<8x128xf32>
    %302 = arith.truncf %301 : vector<8x128xf32> to vector<8x128xbf16>
    %c0_130 = arith.constant 0 : index
    %c0_131 = arith.constant 0 : index
    %303 = vector.load %arg3[%c0_130, %c0_131] : memref<128x512xbf16, #tpu.memory_space<vmem>>, vector<128x512xbf16>
    %cst_132 = arith.constant dense<0.000000e+00> : vector<8x512xf32>
    %304 = tpu.matmul %302, %303, %cst_132 {dimension_numbers = #tpu.dot_dimension_numbers<[1], [0], [0], [1], [0, 0, 1, 1], [], []>} : vector<8x128xbf16>, vector<128x512xbf16>, vector<8x512xf32> -> vector<8x512xf32>
    %305 = arith.addf %300, %304 : vector<8x512xf32>
    %306 = vector.extract_strided_slice %305 {offsets = [0, 0], sizes = [8, 128], strides = [1, 1]} : vector<8x512xf32> to vector<8x128xf32>
    %307 = arith.negf %306 : vector<8x128xf32>
    %308 = math.exp %307 : vector<8x128xf32>
    %cst_133 = arith.constant 1.000000e+00 : f32
    %309 = vector.broadcast %cst_133 : f32 to vector<8x128xf32>
    %310 = arith.addf %309, %308 : vector<8x128xf32>
    %311 = arith.divf %309, %310 : vector<8x128xf32>
    %312 = vector.extract_strided_slice %305 {offsets = [0, 128], sizes = [8, 128], strides = [1, 1]} : vector<8x512xf32> to vector<8x128xf32>
    %313 = arith.negf %312 : vector<8x128xf32>
    %314 = math.exp %313 : vector<8x128xf32>
    %cst_134 = arith.constant 1.000000e+00 : f32
    %315 = vector.broadcast %cst_134 : f32 to vector<8x128xf32>
    %316 = arith.addf %315, %314 : vector<8x128xf32>
    %317 = arith.divf %315, %316 : vector<8x128xf32>
    %318 = vector.extract_strided_slice %305 {offsets = [0, 256], sizes = [8, 128], strides = [1, 1]} : vector<8x512xf32> to vector<8x128xf32>
    %319 = math.tanh %318 : vector<8x128xf32>
    %320 = vector.extract_strided_slice %305 {offsets = [0, 384], sizes = [8, 128], strides = [1, 1]} : vector<8x512xf32> to vector<8x128xf32>
    %321 = arith.negf %320 : vector<8x128xf32>
    %322 = math.exp %321 : vector<8x128xf32>
    %cst_135 = arith.constant 1.000000e+00 : f32
    %323 = vector.broadcast %cst_135 : f32 to vector<8x128xf32>
    %324 = arith.addf %323, %322 : vector<8x128xf32>
    %325 = arith.divf %323, %324 : vector<8x128xf32>
    %c0_136 = arith.constant 0 : index
    %c0_137 = arith.constant 0 : index
    %326 = vector.load %arg7[%c0_136, %c0_137] : memref<8x128xf32, #tpu.memory_space<vmem>>, vector<8x128xf32>
    %327 = arith.mulf %317, %326 : vector<8x128xf32>
    %328 = arith.mulf %311, %319 : vector<8x128xf32>
    %329 = arith.addf %327, %328 : vector<8x128xf32>
    %330 = math.tanh %329 : vector<8x128xf32>
    %331 = arith.mulf %325, %330 : vector<8x128xf32>
    %c0_138 = arith.constant 0 : index
    %c0_139 = arith.constant 0 : index
    %332 = vector.load %arg7[%c0_138, %c0_139] : memref<8x128xf32, #tpu.memory_space<vmem>>, vector<8x128xf32>
    tpu.vector_store %arg7[%c0_138, %c0_139], %329 {strides = array<i32>} : memref<8x128xf32, #tpu.memory_space<vmem>>, vector<8x128xf32>,
    %c0_140 = arith.constant 0 : index
    %c0_141 = arith.constant 0 : index
    %333 = vector.load %arg6[%c0_140, %c0_141] : memref<8x128xf32, #tpu.memory_space<vmem>>, vector<8x128xf32>
    tpu.vector_store %arg6[%c0_140, %c0_141], %331 {strides = array<i32>} : memref<8x128xf32, #tpu.memory_space<vmem>>, vector<8x128xf32>,
    %334 = arith.truncf %331 : vector<8x128xf32> to vector<8x128xbf16>
    %335 = arith.index_cast %c7_i32 : i32 to index
    %c0_142 = arith.constant 0 : index
    %c0_143 = arith.constant 0 : index
    %336 = vector.load %arg4[%335, %c0_142, %c0_143] : memref<8x8x128xbf16, #tpu.memory_space<vmem>>, vector<1x8x128xbf16>
    %337 = vector.shape_cast %336 : vector<1x8x128xbf16> to vector<8x128xbf16>
    %338 = vector.shape_cast %334 : vector<8x128xbf16> to vector<1x8x128xbf16>
    tpu.vector_store %arg4[%335, %c0_142, %c0_143], %338 {strides = array<i32>} : memref<8x8x128xbf16, #tpu.memory_space<vmem>>, vector<1x8x128xbf16>,
    %c8_i32 = arith.constant 8 : i32
    %c0_i32_144 = arith.constant 0 : i32
    %339 = arith.cmpi eq, %arg1, %c0_i32_144 : i32
    %340 = arith.extui %339 : i1 to i32
    %c0_i32_145 = arith.constant 0 : i32
    %341 = arith.cmpi ne, %340, %c0_i32_145 : i32
    scf.if %341 {
      %c0_146 = arith.constant 0 : index
      %c0_147 = arith.constant 0 : index
      %342 = vector.load %arg7[%c0_146, %c0_147] : memref<8x128xf32, #tpu.memory_space<vmem>>, vector<8x128xf32>
      %c0_148 = arith.constant 0 : index
      %c0_149 = arith.constant 0 : index
      %343 = vector.load %arg5[%c0_148, %c0_149] : memref<8x128xf32, #tpu.memory_space<vmem>>, vector<8x128xf32>
      tpu.vector_store %arg5[%c0_148, %c0_149], %342 {strides = array<i32>} : memref<8x128xf32, #tpu.memory_space<vmem>>, vector<8x128xf32>,
    } else {
    }
    return
  }
  func.func @transform_0(%arg0: i32, %arg1: i32) -> (i32, i32, i32) {
    %c0_i32 = arith.constant 0 : i32
    %c0_i32_0 = arith.constant 0 : i32
    return %arg1, %arg0, %c0_i32 : i32, i32, i32
  }
  func.func @transform_1(%arg0: i32, %arg1: i32) -> (i32, i32) {
    %c0_i32 = arith.constant 0 : i32
    %c0_i32_0 = arith.constant 0 : i32
    %c0_i32_1 = arith.constant 0 : i32
    return %c0_i32, %c0_i32_0 : i32, i32
  }
  func.func @transform_2(%arg0: i32, %arg1: i32) -> (i32, i32, i32) {
    %c0_i32 = arith.constant 0 : i32
    %c0_i32_0 = arith.constant 0 : i32
    return %arg1, %arg0, %c0_i32 : i32, i32, i32
  }
  func.func @transform_3(%arg0: i32, %arg1: i32) -> (i32, i32) {
    %c0_i32 = arith.constant 0 : i32
    %c0_i32_0 = arith.constant 0 : i32
    return %arg0, %c0_i32 : i32, i32
  }
}

</mosaic_0001>

<bundles_post_ra>
// kernel: network_forward.9
= control target key start
LH: loop header
LB: loop body
LE: loop exit
PB: predicated region body
PF: predicated region fallthrough
CT: control target
= control target key end

     0   :  { %s434_s1 = inlined_call_operand.vmem [shape: bf16[128,128], index: 1, kind: input, shape index: {}]   ;;  %s435_s0 = inlined_call_operand.vmem [shape: bf16[64,128], index: 0, kind: input, shape index: {}]   ;;  %s436_s2 = inlined_call_operand.vmem [shape: f32[1,128], index: 2, kind: input, shape index: {}]   ;;  %s437_s3 = inlined_call_operand.vmem [shape: f32[64,128], index: 3, kind: output, shape index: {}]  }
   0x1   :  { %v339_v0 = vld [vmem:[%s434_s1 + $0x38] sm:$0xff]   ;;  %v340_v1 = vld [vmem:[%s434_s1 + $0x30] sm:$0xff]   ;;  %v341_v2 = vld [vmem:[%s434_s1 + $0x28] sm:$0xff]  }
   0x2   :  { %299 = vmatprep.subr.bf16.mxu0 %v339_v0  ;;  %323 = vmatprep.subr.bf16.mxu1 %v339_v0  ;;  %v342_v3 = vld [vmem:[%s434_s1 + $0x20] sm:$0xff]   ;;  %v348_v5 = vld [vmem:[%s435_s0 + $0x10] sm:$0xff]   ;;  %v343_v6 = vld [vmem:[%s434_s1 + $0x18] sm:$0xff]  }
   0x3   :  { %300 = vmatpush3.bf16.msra.mxu0 %v339_v0  ;;  %331 = vmatpush3.bf16.msra.mxu1 %v339_v0  ;;  %v347_v4 = vld [vmem:[%s435_s0] sm:$0xff]   ;;  %v344_v7 = vld [vmem:[%s434_s1 + $0x10] sm:$0xff]   ;;  %v345_v8 = vld [vmem:[%s434_s1 + $0x8] sm:$0xff]  }
   0x4   :  { %301 = vmatprep.subr.bf16.mxu0 %v340_v1  ;;  %324 = vmatprep.subr.bf16.mxu1 %v340_v1  ;;  %v346_v9 = vld [vmem:[%s434_s1] sm:$0xff]   ;;  %v349_v10 = vld [vmem:[%s435_s0 + $0x8] sm:$0xff]   ;;  %v350_v11 = vld [vmem:[%s435_s0 + $0x18] sm:$0xff]  }
   0x5   :  { %315 = vmatprep.mubr.bf16.mxu0 %v347_v4  ;;  %319 = vmatprep.mubr.bf16.mxu1 %v348_v5  ;;  %v286_v12 = vld [vmem:[%s436_s2] ss:$0 sm:$0xff] }
   0x7   :  { %302 = vmatpush3.bf16.msra.mxu0 %v340_v1  ;;  %332 = vmatpush3.bf16.msra.mxu1 %v340_v1 }
   0x8   :  { %303 = vmatprep.subr.bf16.mxu0 %v341_v2  ;;  %325 = vmatprep.subr.bf16.mxu1 %v341_v2 }
   0xb   :  { %304 = vmatpush3.bf16.msra.mxu0 %v341_v2  ;;  %333 = vmatpush3.bf16.msra.mxu1 %v341_v2 }
   0xc   :  { %305 = vmatprep.subr.bf16.mxu0 %v342_v3  ;;  %326 = vmatprep.subr.bf16.mxu1 %v342_v3 }
   0xf   :  { %306 = vmatpush3.bf16.msra.mxu0 %v342_v3  ;;  %334 = vmatpush3.bf16.msra.mxu1 %v342_v3 }
  0x10   :  { %307 = vmatprep.subr.bf16.mxu0 %v343_v6  ;;  %327 = vmatprep.subr.bf16.mxu1 %v343_v6 }
  0x13   :  { %308 = vmatpush3.bf16.msra.mxu0 %v343_v6  ;;  %335 = vmatpush3.bf16.msra.mxu1 %v343_v6 }
  0x14   :  { %309 = vmatprep.subr.bf16.mxu0 %v344_v7  ;;  %328 = vmatprep.subr.bf16.mxu1 %v344_v7 }
  0x17   :  { %310 = vmatpush3.bf16.msra.mxu0 %v344_v7  ;;  %336 = vmatpush3.bf16.msra.mxu1 %v344_v7 }
  0x18   :  { %311 = vmatprep.subr.bf16.mxu0 %v345_v8  ;;  %329 = vmatprep.subr.bf16.mxu1 %v345_v8 }
  0x1b   :  { %312 = vmatpush3.bf16.msra.mxu0 %v345_v8  ;;  %337 = vmatpush3.bf16.msra.mxu1 %v345_v8 }
  0x1c   :  { %313 = vmatprep.subr.bf16.mxu0 %v346_v9  ;;  %330 = vmatprep.subr.bf16.mxu1 %v346_v9 }
  0x1f   :  { %314 = vmatpush3.bf16.msra.mxu0 %v346_v9  ;;  %338 = vmatpush3.bf16.msra.mxu1 %v346_v9 }
  0x22   :  { %316 = vmatmul.mubr.bf16.vlgmr.msra.gmra.mxu0 %v349_v10  ;;  %320 = vmatmul.mubr.bf16.vlgmr.msra.gmra.mxu1 %v350_v11 }
  0xe2   :  { %v317_v13 = vpop.f32.mrf.mxu0  ;;  %v321_v14 = vpop.f32.mrf.mxu1 }
  0xe3   :  { %v232_v15 = vadd.f32 %v317_v13, %v286_v12  ;;  %v236_v16 = vadd.f32 %v321_v14, %v286_v12 }
  0xe4   :  { %v165_v17 = vpop.f32.mrf.mxu0  ;;  %v181_v18 = vpop.f32.mrf.mxu1 }
  0xe5   :  { %vm240_vm0 = vcmp.gt.f32.partialorder %v232_v15, 0.0  ;;  %v248_v19 = vmul.f32 0.01, %v232_v15  ;;  %vm244_vm1 = vcmp.gt.f32.partialorder %v236_v16, 0.0  ;;  %v252_v20 = vmul.f32 0.01, %v236_v16 }
  0xe6   :  { %v230_v21 = vadd.f32 %v286_v12, %v165_v17  ;;  %v234_v22 = vadd.f32 %v286_v12, %v181_v18  ;;  %v318_v23 = vpop.f32.mrf.mxu0  ;;  %v322_v24 = vpop.f32.mrf.mxu1 }
  0xe7   :  { %v256_v25 = vsel %vm240_vm0, %v232_v15, %v248_v19  ;;  %v260_v26 = vsel %vm244_vm1, %v236_v16, %v252_v20  ;;  %v233_v27 = vadd.f32 %v318_v23, %v286_v12  ;;  %v237_v28 = vadd.f32 %v322_v24, %v286_v12 }
  0xe8   :  { %264 = vst [vmem:[%s437_s3 + $0x10] sm:$0xff] %v256_v25  ;;  %268 = vst [vmem:[%s437_s3 + $0x30] sm:$0xff] %v260_v26  ;;  %vm238_vm2 = vcmp.gt.f32.partialorder %v230_v21, 0.0  ;;  %v246_v29 = vmul.f32 0.01, %v230_v21  ;;  %vm242_vm3 = vcmp.gt.f32.partialorder %v234_v22, 0.0  ;;  %v168_v31 = vpop.f32.mrf.mxu0  ;;  %v184_v32 = vpop.f32.mrf.mxu1 }
  0xe9   :  { %v250_v30 = vmul.f32 0.01, %v234_v22  ;;  %vm241_vm4 = vcmp.gt.f32.partialorder %v233_v27, 0.0  ;;  %v249_v33 = vmul.f32 0.01, %v233_v27  ;;  %vm245_vm5 = vcmp.gt.f32.partialorder %v237_v28, 0.0 }
  0xea   :  { %v253_v34 = vmul.f32 0.01, %v237_v28  ;;  %v254_v35 = vsel %vm238_vm2, %v230_v21, %v246_v29  ;;  %v231_v37 = vadd.f32 %v286_v12, %v168_v31  ;;  %v235_v38 = vadd.f32 %v286_v12, %v184_v32 }
  0xeb   :  { %v258_v36 = vsel %vm242_vm3, %v234_v22, %v250_v30  ;;  %262 = vst [vmem:[%s437_s3] sm:$0xff] %v254_v35  ;;  %v257_v39 = vsel %vm241_vm4, %v233_v27, %v249_v33 }
  0xec   :  { %266 = vst [vmem:[%s437_s3 + $0x20] sm:$0xff] %v258_v36  ;;  %v261_v40 = vsel %vm245_vm5, %v237_v28, %v253_v34  ;;  %265 = vst [vmem:[%s437_s3 + $0x18] sm:$0xff] %v257_v39  ;;  %vm239_vm6 = vcmp.gt.f32.partialorder %v231_v37, 0.0  ;;  %v247_v41 = vmul.f32 0.01, %v231_v37  ;;  %vm243_vm7 = vcmp.gt.f32.partialorder %v235_v38, 0.0 }
  0xed   :  { %269 = vst [vmem:[%s437_s3 + $0x38] sm:$0xff] %v261_v40  ;;  %v251_v42 = vmul.f32 0.01, %v235_v38 }
  0xee   :  { %v255_v43 = vsel %vm239_vm6, %v231_v37, %v247_v41 }
  0xef   :  { %v259_v44 = vsel %vm243_vm7, %v235_v38, %v251_v42  ;;  %263 = vst [vmem:[%s437_s3 + $0x8] sm:$0xff] %v255_v43 }
  0xf0   :  { %267 = vst [vmem:[%s437_s3 + $0x28] sm:$0xff] %v259_v44 }

// kernel: network_forward.5
= control target key start
LH: loop header
LB: loop body
LE: loop exit
PB: predicated region body
PF: predicated region fallthrough
CT: control target
= control target key end

     0   :  { %s1092_s12 = smov 0   ;;  %s1094_s13 = smov 0   ;;  %s1238_s0 = inlined_call_operand.vmem [shape: bf16[64,128], index: 0, kind: input, shape index: {}]   ;;  %s1239_s1 = inlined_call_operand.vmem [shape: bf16[128,512], index: 1, kind: input, shape index: {}]   ;;  %s1240_s2 = inlined_call_operand.vmem [shape: f32[1,512], index: 2, kind: input, shape index: {}]   ;;  %s1241_s3 = inlined_call_operand.vmem [shape: bf16[64,512], index: 3, kind: output, shape index: {}]  }
   0x1   :  { %s1096_s14 = smov 0   ;;  %s1098_s15 = smov 0  }
   0x2   :  { %s1100_s16 = smov 0  }
   0x3 LB: > { %s28_s17 = sadd.s32 1, %s1065_s15  ;;  %s891_s18 = sadd.s32 4294967295, %s1069_s16   ;;  %s1069_s16 = sphi %s1100_s16, %s13_s16   ;;  %s1065_s15 = sphi %s1098_s15, %s1246_s15   ;;  %s1061_s14 = sphi %s1096_s14, %s1245_s14   ;;  %s1057_s13 = sphi %s1094_s13, %s1244_s13   ;;  %s1053_s12 = sphi %s1092_s12, %s1243_s12  }
   0x4   : > { %p30_p0 = scmp.ge.s32.totalorder %s28_s17, 2  ;;  %p76_p1 = scmp.ne.s32.totalorder %s1057_s13, %s1053_s12 }
   0x5   : > { %p77_p2 = scmp.eq.s32.totalorder %s1069_s16, 0  ;;  %p134_p4 = scmp.eq.s32.totalorder %s891_s18, 1 }
   0x6   : > { %s1248_s17 = smov (%p30_p0, %s28_s17), 0  ;;  %s69_s20 = sadd.s32 1, %s1057_s13 }
   0x7   : > { %p78_p3 = por %p77_p2, %p76_p1  ;;  %s65_s19 = ssub.s32 %s1065_s15, %s1248_s17 }
   0x8   : > { %p67_p5 = scmp.eq.s32.totalorder %s65_s19, 0  ;;  %p1127_p6 = por %p134_p4, %p76_p1 }
   0x9   : > { %p895_p7 = scmp.ge.s32.totalorder %s1069_s16, 2 }
   0xa   : > { %s1132_s22 = scalar_select %p67_p5, %s1057_s13, %s69_s20  }
   0xb   : > { %168 = sbr.rel (%p895_p7) target bundleno = 28 (0x1c), region = 20 }
  0x10   : > { %171 = sbr.rel (!%p78_p3) target bundleno = 28 (0x1c), region = 24  ;;  %s173_s23 = sand.u32 (%p78_p3), 1, %s1057_s13  }
  0x11   : > { %s936_s24 = sshll.u32 (%p78_p3), %s1065_s15, 3  ;;  %s896_s25 = sshll.u32 (%p78_p3), %s173_s23, 7 }
  0x12   : > { %s1140_s28 = scalar_lea.vmem (%p78_p3), %s1239_s1, %s936_s24  ;;  %s175_s29 = scalar_lea.vmem (%p78_p3), [#allocation3], %s896_s25 }
  0x13   : > { %v240_v0 = vld [vmem:[%s1140_s28] sm:$0xff] (%p78_p3)  ;;  %v242_v1 = vld [vmem:[%s1140_s28 + $0x10] sm:$0xff] (%p78_p3) }
  0x14   : > { %v244_v2 = vld [vmem:[%s1140_s28 + $0x20] sm:$0xff] (%p78_p3)  ;;  %241 = vst [vmem:[%s175_s29] sm:$0xff] (%p78_p3), %v240_v0  ;;  %243 = vst [vmem:[%s175_s29 + $0x8] sm:$0xff] (%p78_p3), %v242_v1  ;;  %v246_v3 = vld [vmem:[%s1140_s28 + $0x30] sm:$0xff] (%p78_p3) }
  0x15   : > { %245 = vst [vmem:[%s175_s29 + $0x10] sm:$0xff] %v244_v2  ;;  %v248_v4 = vld [vmem:[%s1140_s28 + $0x40] sm:$0xff]  ;;  %v250_v5 = vld [vmem:[%s1140_s28 + $0x50] sm:$0xff]  ;;  %247 = vst [vmem:[%s175_s29 + $0x18] sm:$0xff] %v246_v3 }
  0x16   : > { %249 = vst [vmem:[%s175_s29 + $0x20] sm:$0xff] %v248_v4  ;;  %251 = vst [vmem:[%s175_s29 + $0x28] sm:$0xff] %v250_v5  ;;  %v252_v6 = vld [vmem:[%s1140_s28 + $0x60] sm:$0xff]  ;;  %v254_v7 = vld [vmem:[%s1140_s28 + $0x70] sm:$0xff] }
  0x17   : > { %v256_v8 = vld [vmem:[%s1140_s28 + $0x80] sm:$0xff]  ;;  %253 = vst [vmem:[%s175_s29 + $0x30] sm:$0xff] %v252_v6  ;;  %255 = vst [vmem:[%s175_s29 + $0x38] sm:$0xff] %v254_v7  ;;  %v258_v9 = vld [vmem:[%s1140_s28 + $0x90] sm:$0xff] }
  0x18   : > { %257 = vst [vmem:[%s175_s29 + $0x40] sm:$0xff] %v256_v8  ;;  %v260_v10 = vld [vmem:[%s1140_s28 + $0xa0] sm:$0xff]  ;;  %v262_v11 = vld [vmem:[%s1140_s28 + $0xb0] sm:$0xff]  ;;  %259 = vst [vmem:[%s175_s29 + $0x48] sm:$0xff] %v258_v9 }
  0x19   : > { %261 = vst [vmem:[%s175_s29 + $0x50] sm:$0xff] %v260_v10  ;;  %263 = vst [vmem:[%s175_s29 + $0x58] sm:$0xff] %v262_v11  ;;  %v264_v12 = vld [vmem:[%s1140_s28 + $0xc0] sm:$0xff]  ;;  %v266_v13 = vld [vmem:[%s1140_s28 + $0xd0] sm:$0xff] }
  0x1a   : > { %v268_v14 = vld [vmem:[%s1140_s28 + $0xe0] sm:$0xff]  ;;  %265 = vst [vmem:[%s175_s29 + $0x60] sm:$0xff] %v264_v12  ;;  %267 = vst [vmem:[%s175_s29 + $0x68] sm:$0xff] %v266_v13  ;;  %v270_v15 = vld [vmem:[%s1140_s28 + $0xf0] sm:$0xff] }
  0x1b   : > { %269 = vst [vmem:[%s175_s29 + $0x70] sm:$0xff] %v268_v14  ;;  %271 = vst [vmem:[%s175_s29 + $0x78] sm:$0xff] %v270_v15 }
  0x1c PF: > { %p899_p8 = scmp.ge.s32.totalorder %s1069_s16, 1  ;;  %p284_p9 = scmp.lt.s32.totalorder %s1069_s16, 3 }
  0x1e   : > { %p285_p10 = pnand %p899_p8, %p284_p9 }
  0x1f   : > { %s291_s30 = sand.u32 (!%p285_p10), 1, %s1053_s12   ;;  %s902_s20 = sshll.u32 (!%p285_p10), %s1061_s14, 1 }
  0x20   : > { %288 = sbr.rel (%p285_p10) target bundleno = 292 (0x124), region = 66  ;;  %s900_s4 = sshll.u32 (!%p285_p10), %s291_s30, 7 }
  0x21   : > { %s1163_s5 = scalar_lea.vmem (!%p285_p10), [#allocation3], %s900_s4  ;;  %p337_p11 = scmp.lt.s32.totalorder (!%p285_p10), %s902_s20, 3 }
  0x22   : > { %s901_s26 = sshll.u32 (!%p285_p10), %s291_s30, 6 }
  0x23   : > { %s1199_s27 = scalar_lea.vmem (!%p285_p10), [#allocation4], %s901_s26 }
  0x25   : > { %v1071_v16 = vmov 0   ;;  %v1003_v17 = vld [vmem:[%s1163_s5 + $0x74] ss:$8 sps:$4 sm:$0xff]   ;;  %v1005_v18 = vld [vmem:[%s1163_s5 + $0x70] ss:$8 sps:$4 sm:$0xff]   ;;  %v1027_v33 = vld [vmem:[%s1238_s0] sm:$0xff]   ;;  %v634_v37 = vlaneseq }
  0x26   : > { %540 = vmatprep.mubr.bf16.mxu0 %v1071_v16  ;;  %560 = vmatprep.mubr.bf16.mxu1 %v1071_v16  ;;  %v1006_v19 = vld [vmem:[%s1163_s5 + $0x64] ss:$8 sps:$4 sm:$0xff]   ;;  %v1008_v20 = vld [vmem:[%s1163_s5 + $0x60] ss:$8 sps:$4 sm:$0xff]   ;;  %v1009_v21 = vld [vmem:[%s1163_s5 + $0x54] ss:$8 sps:$4 sm:$0xff]  }
  0x27   : > { %508 = vmatprep.subr.bf16.mxu0 %v1003_v17  ;;  %946 = vmatprep.subr.bf16.mxu1 %v1003_v17  ;;  %v1011_v22 = vld [vmem:[%s1163_s5 + $0x50] ss:$8 sps:$4 sm:$0xff]   ;;  %v1012_v23 = vld [vmem:[%s1163_s5 + $0x44] ss:$8 sps:$4 sm:$0xff]   ;;  %v1014_v24 = vld [vmem:[%s1163_s5 + $0x40] ss:$8 sps:$4 sm:$0xff]  }
  0x28   : > { %509 = vmatpush1.bf16.msra.mxu0 %v1005_v18  ;;  %954 = vmatpush1.bf16.msra.mxu1 %v1005_v18  ;;  %v1015_v25 = vld [vmem:[%s1163_s5 + $0x34] ss:$8 sps:$4 sm:$0xff]   ;;  %v1017_v26 = vld [vmem:[%s1163_s5 + $0x30] ss:$8 sps:$4 sm:$0xff]   ;;  %v1018_v27 = vld [vmem:[%s1163_s5 + $0x24] ss:$8 sps:$4 sm:$0xff]  }
  0x29   : > { %510 = vmatprep.subr.bf16.mxu0 %v1006_v19  ;;  %947 = vmatprep.subr.bf16.mxu1 %v1006_v19  ;;  %v1020_v28 = vld [vmem:[%s1163_s5 + $0x20] ss:$8 sps:$4 sm:$0xff]   ;;  %v1021_v29 = vld [vmem:[%s1163_s5 + $0x14] ss:$8 sps:$4 sm:$0xff]   ;;  %v1023_v30 = vld [vmem:[%s1163_s5 + $0x10] ss:$8 sps:$4 sm:$0xff]  }
  0x2a   : > { %v1024_v31 = vld [vmem:[%s1163_s5 + $0x4] ss:$8 sps:$4 sm:$0xff]   ;;  %v1026_v32 = vld [vmem:[%s1163_s5] ss:$8 sps:$4 sm:$0xff]   ;;  %v1028_v34 = vld [vmem:[%s1238_s0 + $0x10] sm:$0xff]   ;;  %s1250_s20 = smov (!%p337_p11, %s902_s20), 3 }
  0x2b   : > { %v1029_v35 = vld [vmem:[%s1238_s0 + $0x8] sm:$0xff]   ;;  %v1030_v36 = vld [vmem:[%s1238_s0 + $0x18] sm:$0xff]   ;;  %v635_v38 = vshrl.u32 %v634_v37, 7  ;;  %s339_s25 = scalar_lea.vmem %s1240_s2, %s1250_s20  ;;  %s945_s12 = sshll.u32 (%p1127_p6), %s1061_s14, 3 }
  0x2c   : > { %511 = vmatpush1.bf16.msra.mxu0 %v1008_v20  ;;  %955 = vmatpush1.bf16.msra.mxu1 %v1008_v20  ;;  %v632_v41 = vld [vmem:[%s339_s25] sm:$0x3]  ;;  %s728_s30 = scalar_lea.vmem (%p1127_p6), %s1241_s3, %s945_s12 }
  0x2d   : > { %512 = vmatprep.subr.bf16.mxu0 %v1009_v21  ;;  %948 = vmatprep.subr.bf16.mxu1 %v1009_v21  ;;  %v636_v39 = vsub.s32 0, %v635_v38  ;;  %v640_v40 = vsub.s32 1, %v635_v38 }
  0x2f   : > { %v637_v42 = vrot.slane %v632_v41, %v636_v39  ;;  %v641_v43 = vrot.slane %v632_v41, %v640_v40 }
  0x30   : > { %513 = vmatpush1.bf16.msra.mxu0 %v1011_v22  ;;  %956 = vmatpush1.bf16.msra.mxu1 %v1011_v22 }
  0x31   : > { %514 = vmatprep.subr.bf16.mxu0 %v1012_v23  ;;  %949 = vmatprep.subr.bf16.mxu1 %v1012_v23 }
  0x34   : > { %515 = vmatpush1.bf16.msra.mxu0 %v1014_v24  ;;  %957 = vmatpush1.bf16.msra.mxu1 %v1014_v24 }
  0x35   : > { %516 = vmatprep.subr.bf16.mxu0 %v1015_v25  ;;  %950 = vmatprep.subr.bf16.mxu1 %v1015_v25 }
  0x38   : > { %517 = vmatpush1.bf16.msra.mxu0 %v1017_v26  ;;  %958 = vmatpush1.bf16.msra.mxu1 %v1017_v26 }
  0x39   : > { %518 = vmatprep.subr.bf16.mxu0 %v1018_v27  ;;  %951 = vmatprep.subr.bf16.mxu1 %v1018_v27 }
  0x3c   : > { %519 = vmatpush1.bf16.msra.mxu0 %v1020_v28  ;;  %959 = vmatpush1.bf16.msra.mxu1 %v1020_v28 }
  0x3d   : > { %520 = vmatprep.subr.bf16.mxu0 %v1021_v29  ;;  %952 = vmatprep.subr.bf16.mxu1 %v1021_v29 }
  0x40   : > { %521 = vmatpush1.bf16.msra.mxu0 %v1023_v30  ;;  %960 = vmatpush1.bf16.msra.mxu1 %v1023_v30 }
  0x41   : > { %522 = vmatprep.subr.bf16.mxu0 %v1024_v31  ;;  %953 = vmatprep.subr.bf16.mxu1 %v1024_v31 }
  0x44   : > { %523 = vmatpush1.bf16.msra.mxu0 %v1026_v32  ;;  %961 = vmatpush1.bf16.msra.mxu1 %v1026_v32 }
  0x47   : > { %541 = vmatmul.mubr.bf16.vlgmr.msra.gmra.mxu0 %v1027_v33  ;;  %561 = vmatmul.mubr.bf16.vlgmr.msra.gmra.mxu1 %v1028_v34 }
  0x48   : > { %550 = vmatprep.mubr.bf16.mxu0 %v1071_v16  ;;  %570 = vmatprep.mubr.bf16.mxu1 %v1071_v16 }
  0x4f   : > { %551 = vmatmul.mubr.bf16.gmra.mxu0 %v1029_v35  ;;  %571 = vmatmul.mubr.bf16.gmra.mxu1 %v1030_v36 }
 0x107   : > { %v542_v44 = vpop.f32.mrf.mxu0  ;;  %v562_v45 = vpop.f32.mrf.mxu1 }
 0x108   : > { %v644_v48 = vadd.f32 %v637_v42, %v542_v44  ;;  %v652_v49 = vadd.f32 %v637_v42, %v562_v45 }
 0x109   : > { %v544_v46 = vpop.f32.mrf.mxu0  ;;  %v564_v47 = vpop.f32.mrf.mxu1 }
 0x10a   : > { %v645_v50 = vadd.f32 %v641_v43, %v544_v46  ;;  %v653_v51 = vadd.f32 %v641_v43, %v564_v47 }
 0x10b   : > { %v546_v52 = vpop.f32.mrf.mxu0  ;;  %v566_v53 = vpop.f32.mrf.mxu1 }
 0x10c   : > { %v937_v54 = vpack.c.bf16 %v645_v50, %v644_v48  ;;  %v941_v55 = vpack.c.bf16 %v653_v51, %v652_v49  ;;  %v646_v58 = vadd.f32 %v637_v42, %v546_v52  ;;  %v654_v59 = vadd.f32 %v637_v42, %v566_v53 }
 0x10d   : > { %v548_v56 = vpop.f32.mrf.mxu0  ;;  %v568_v57 = vpop.f32.mrf.mxu1 }
 0x10e   : > { %708 = vst [vmem:[%s1199_s27] sm:$0xff] %v937_v54  ;;  %712 = vst [vmem:[%s1199_s27 + $0x20] sm:$0xff] %v941_v55  ;;  %v647_v60 = vadd.f32 %v641_v43, %v548_v56  ;;  %v655_v61 = vadd.f32 %v641_v43, %v568_v57 }
 0x10f   : > { %v552_v62 = vpop.f32.mrf.mxu0  ;;  %v572_v63 = vpop.f32.mrf.mxu1 }
 0x110   : > { %v938_v0 = vpack.c.bf16 %v647_v60, %v646_v58  ;;  %v942_v1 = vpack.c.bf16 %v655_v61, %v654_v59  ;;  %v648_v4 = vadd.f32 %v637_v42, %v552_v62  ;;  %v656_v5 = vadd.f32 %v637_v42, %v572_v63 }
 0x111   : > { %v554_v2 = vpop.f32.mrf.mxu0  ;;  %v574_v3 = vpop.f32.mrf.mxu1 }
 0x112   : > { %709 = vst [vmem:[%s1199_s27 + $0x8] sm:$0xff] %v938_v0  ;;  %713 = vst [vmem:[%s1199_s27 + $0x28] sm:$0xff] %v942_v1  ;;  %v649_v6 = vadd.f32 %v641_v43, %v554_v2  ;;  %v657_v7 = vadd.f32 %v641_v43, %v574_v3 }
 0x113   : > { %v556_v8 = vpop.f32.mrf.mxu0  ;;  %v576_v9 = vpop.f32.mrf.mxu1 }
 0x114   : > { %v939_v10 = vpack.c.bf16 %v649_v6, %v648_v4  ;;  %v943_v11 = vpack.c.bf16 %v657_v7, %v656_v5  ;;  %v650_v14 = vadd.f32 %v637_v42, %v556_v8  ;;  %v658_v15 = vadd.f32 %v637_v42, %v576_v9 }
 0x115   : > { %v558_v12 = vpop.f32.mrf.mxu0  ;;  %v578_v13 = vpop.f32.mrf.mxu1  ;;  %v771_v20 = vld [vmem:[%s1199_s27] sm:$0xff] (%p1127_p6) }
 0x116   : > { %710 = vst [vmem:[%s1199_s27 + $0x10] sm:$0xff] %v939_v10  ;;  %714 = vst [vmem:[%s1199_s27 + $0x30] sm:$0xff] %v943_v11  ;;  %v651_v16 = vadd.f32 %v641_v43, %v558_v12  ;;  %v659_v17 = vadd.f32 %v641_v43, %v578_v13  ;;  %722 = sbr.rel (!%p1127_p6) target bundleno = 292 (0x124), region = 82  ;;  %v779_v24 = vld [vmem:[%s1199_s27 + $0x20] sm:$0xff] (%p1127_p6) }
 0x117   : > { %772 = vst [vmem:[%s728_s30] sm:$0xff] (%p1127_p6), %v771_v20  ;;  %780 = vst [vmem:[%s728_s30 + $0x40] sm:$0xff] (%p1127_p6), %v779_v24 }
 0x118   : > { %v940_v18 = vpack.c.bf16 %v651_v16, %v650_v14  ;;  %v944_v19 = vpack.c.bf16 %v659_v17, %v658_v15 }
 0x119   : > { %v773_v21 = vld [vmem:[%s1199_s27 + $0x8] sm:$0xff] (%p1127_p6) }
 0x11a   : > { %711 = vst [vmem:[%s1199_s27 + $0x18] sm:$0xff] %v940_v18  ;;  %715 = vst [vmem:[%s1199_s27 + $0x38] sm:$0xff] %v944_v19  ;;  %v781_v25 = vld [vmem:[%s1199_s27 + $0x28] sm:$0xff] (%p1127_p6) }
 0x11b   : > { %774 = vst [vmem:[%s728_s30 + $0x10] sm:$0xff] %v773_v21  ;;  %782 = vst [vmem:[%s728_s30 + $0x50] sm:$0xff] %v781_v25 }
 0x11d   : > { %v775_v22 = vld [vmem:[%s1199_s27 + $0x10] sm:$0xff] }
 0x11e   : > { %776 = vst [vmem:[%s728_s30 + $0x20] sm:$0xff] %v775_v22  ;;  %v783_v26 = vld [vmem:[%s1199_s27 + $0x30] sm:$0xff] }
 0x11f   : > { %784 = vst [vmem:[%s728_s30 + $0x60] sm:$0xff] %v783_v26 }
 0x121   : > { %v777_v23 = vld [vmem:[%s1199_s27 + $0x18] sm:$0xff] }
 0x122   : > { %778 = vst [vmem:[%s728_s30 + $0x30] sm:$0xff] %v777_v23  ;;  %v785_v27 = vld [vmem:[%s1199_s27 + $0x38] sm:$0xff] }
 0x123   : > { %786 = vst [vmem:[%s728_s30 + $0x70] sm:$0xff] %v785_v27 }
 0x124 PF: > { %s13_s16 = sadd.s32 1, %s1069_s16   ;;  %s1243_s12 = smov %s1057_s13 }
 0x125   : > { %p10_p12 = scmp.ge.s32.totalorder %s13_s16, 4   ;;  %s1244_s13 = smov %s1132_s22 }
 0x126   : > { %s1245_s14 = smov %s1065_s15  ;;  %s1246_s15 = smov %s1248_s17 }
 0x127   :  { %12 = sbr.rel (!%p10_p12) target bundleno = 3 (0x3), region = 157 }

// kernel: network_forward.6
= control target key start
LH: loop header
LB: loop body
LE: loop exit
PB: predicated region body
PF: predicated region fallthrough
CT: control target
= control target key end

     0   :  { %v3094_v1 = vmov 0   ;;  %v3095_v33 = vmov 0.0|0.0   ;;  %s3807_s1 = inlined_call_operand.vmem [shape: bf16[128,512], index: 1, kind: input, shape index: {}]   ;;  %s3808_s0 = inlined_call_operand.vmem [shape: bf16[8,8,512], index: 0, kind: input, shape index: {}]   ;;  %s3809_s2 = inlined_call_operand.vmem [shape: bf16[8,8,128], index: 2, kind: output, shape index: {0}]   ;;  %s3810_s3 = inlined_call_operand.vmem [shape: f32[8,128], index: 3, kind: output, shape index: {1}]  }
   0x1   :  { %v3119_v0 = vld [vmem:[%s3807_s1 + $0xe4] ss:$16 sps:$4 sm:$0xff]   ;;  %252 = vmatprep.mubr.bf16.mxu0 %v3094_v1  ;;  %293 = vmatprep.mubr.bf16.mxu1 %v3094_v1  ;;  %v3126_v2 = vld [vmem:[%s3807_s1 + $0xe0] ss:$16 sps:$4 sm:$0xff]   ;;  %v3149_v6 = vld [vmem:[%s3807_s1 + $0xec] ss:$16 sps:$4 sm:$0xff]  }
   0x2   :  { %220 = vmatprep.subr.bf16.mxu0 %v3119_v0  ;;  %v3132_v3 = vld [vmem:[%s3807_s1 + $0xc4] ss:$16 sps:$4 sm:$0xff]   ;;  %v3138_v4 = vld [vmem:[%s3807_s1 + $0xc0] ss:$16 sps:$4 sm:$0xff]   ;;  %v3154_v7 = vld [vmem:[%s3807_s1 + $0xe8] ss:$16 sps:$4 sm:$0xff]   ;;  %261 = vmatprep.subr.bf16.mxu1 %v3149_v6 }
   0x3   :  { %221 = vmatpush1.bf16.msra.mxu0 %v3126_v2  ;;  %v3144_v5 = vld [vmem:[%s3807_s1 + $0xa4] ss:$16 sps:$4 sm:$0xff]   ;;  %v3160_v8 = vld [vmem:[%s3807_s1 + $0xa0] ss:$16 sps:$4 sm:$0xff]   ;;  %262 = vmatpush1.bf16.msra.mxu1 %v3154_v7  ;;  %v3173_v10 = vld [vmem:[%s3807_s1 + $0xcc] ss:$16 sps:$4 sm:$0xff]  }
   0x4   :  { %222 = vmatprep.subr.bf16.mxu0 %v3132_v3  ;;  %v3167_v9 = vld [vmem:[%s3807_s1 + $0x84] ss:$16 sps:$4 sm:$0xff]   ;;  %v3178_v11 = vld [vmem:[%s3807_s1 + $0xc8] ss:$16 sps:$4 sm:$0xff]   ;;  %263 = vmatprep.subr.bf16.mxu1 %v3173_v10  ;;  %v3185_v12 = vld [vmem:[%s3807_s1 + $0x80] ss:$16 sps:$4 sm:$0xff]  }
   0x5   :  { %v3190_v13 = vld [vmem:[%s3807_s1 + $0x64] ss:$16 sps:$4 sm:$0xff]   ;;  %v3195_v14 = vld [vmem:[%s3807_s1 + $0xac] ss:$16 sps:$4 sm:$0xff]   ;;  %v3202_v15 = vld [vmem:[%s3807_s1 + $0xa8] ss:$16 sps:$4 sm:$0xff]  }
   0x6   :  { %v3208_v16 = vld [vmem:[%s3807_s1 + $0x8c] ss:$16 sps:$4 sm:$0xff]   ;;  %v3214_v17 = vld [vmem:[%s3807_s1 + $0x60] ss:$16 sps:$4 sm:$0xff]   ;;  %v3220_v18 = vld [vmem:[%s3807_s1 + $0x44] ss:$16 sps:$4 sm:$0xff]  }
   0x7   :  { %223 = vmatpush1.bf16.msra.mxu0 %v3138_v4  ;;  %264 = vmatpush1.bf16.msra.mxu1 %v3178_v11  ;;  %v3226_v19 = vld [vmem:[%s3807_s1 + $0x88] ss:$16 sps:$4 sm:$0xff]   ;;  %v3232_v20 = vld [vmem:[%s3807_s1 + $0x6c] ss:$16 sps:$4 sm:$0xff]   ;;  %v3238_v21 = vld [vmem:[%s3807_s1 + $0x40] ss:$16 sps:$4 sm:$0xff]  }
   0x8   :  { %224 = vmatprep.subr.bf16.mxu0 %v3144_v5  ;;  %265 = vmatprep.subr.bf16.mxu1 %v3195_v14  ;;  %v3243_v22 = vld [vmem:[%s3807_s1 + $0x24] ss:$16 sps:$4 sm:$0xff]   ;;  %v3250_v23 = vld [vmem:[%s3807_s1 + $0x68] ss:$16 sps:$4 sm:$0xff]   ;;  %v3255_v24 = vld [vmem:[%s3807_s1 + $0x20] ss:$16 sps:$4 sm:$0xff]  }
   0x9   :  { %v3261_v25 = vld [vmem:[%s3807_s1 + $0x4c] ss:$16 sps:$4 sm:$0xff]   ;;  %v3266_v26 = vld [vmem:[%s3807_s1 + $0x4] ss:$16 sps:$4 sm:$0xff]   ;;  %v3271_v27 = vld [vmem:[%s3807_s1 + $0x48] ss:$16 sps:$4 sm:$0xff]  }
   0xa   :  { %v3277_v28 = vld [vmem:[%s3807_s1 + $0x2c] ss:$16 sps:$4 sm:$0xff]   ;;  %v3284_v29 = vld [vmem:[%s3807_s1] ss:$16 sps:$4 sm:$0xff]   ;;  %v3290_v30 = vld [vmem:[%s3807_s1 + $0x28] ss:$16 sps:$4 sm:$0xff]  }
   0xb   :  { %225 = vmatpush1.bf16.msra.mxu0 %v3160_v8  ;;  %266 = vmatpush1.bf16.msra.mxu1 %v3202_v15  ;;  %v3296_v31 = vld [vmem:[%s3807_s1 + $0xc] ss:$16 sps:$4 sm:$0xff]   ;;  %v3306_v32 = vld [vmem:[%s3807_s1 + $0x8] ss:$16 sps:$4 sm:$0xff]   ;;  %v20_v34 = vld [vmem:[%s3808_s0] sm:$0xff] }
   0xc   :  { %226 = vmatprep.subr.bf16.mxu0 %v3167_v9  ;;  %267 = vmatprep.subr.bf16.mxu1 %v3208_v16  ;;  %v22_v35 = vunpack.c.l.bf16 %v20_v34  ;;  %v23_v36 = vunpack.c.h.bf16 %v20_v34  ;;  %v21_v44 = vld [vmem:[%s3808_s0 + $0x8] sm:$0xff] }
   0xd   :  { %v25_v48 = vunpack.c.h.bf16 %v21_v44  ;;  %v24_v50 = vunpack.c.l.bf16 %v21_v44 }
   0xf   :  { %227 = vmatpush1.bf16.msra.mxu0 %v3185_v12  ;;  %268 = vmatpush1.bf16.msra.mxu1 %v3226_v19 }
  0x10   :  { %228 = vmatprep.subr.bf16.mxu0 %v3190_v13  ;;  %269 = vmatprep.subr.bf16.mxu1 %v3232_v20 }
  0x13   :  { %229 = vmatpush1.bf16.msra.mxu0 %v3214_v17  ;;  %270 = vmatpush1.bf16.msra.mxu1 %v3250_v23 }
  0x14   :  { %230 = vmatprep.subr.bf16.mxu0 %v3220_v18  ;;  %271 = vmatprep.subr.bf16.mxu1 %v3261_v25 }
  0x17   :  { %231 = vmatpush1.bf16.msra.mxu0 %v3238_v21  ;;  %272 = vmatpush1.bf16.msra.mxu1 %v3271_v27 }
  0x18   :  { %232 = vmatprep.subr.bf16.mxu0 %v3243_v22  ;;  %273 = vmatprep.subr.bf16.mxu1 %v3277_v28 }
  0x1b   :  { %233 = vmatpush1.bf16.msra.mxu0 %v3255_v24  ;;  %274 = vmatpush1.bf16.msra.mxu1 %v3290_v30 }
  0x1c   :  { %234 = vmatprep.subr.bf16.mxu0 %v3266_v26  ;;  %275 = vmatprep.subr.bf16.mxu1 %v3296_v31 }
  0x1f   :  { %235 = vmatpush1.bf16.msra.mxu0 %v3284_v29  ;;  %276 = vmatpush1.bf16.msra.mxu1 %v3306_v32 }
  0x20   :  { %536 = vmatprep.subr.bf16.mxu0 %v3119_v0  ;;  %577 = vmatprep.subr.bf16.mxu1 %v3149_v6 }
  0x22   :  { %253 = vmatmul.mubr.bf16.vlgmr.msra.gmra.mxu0 %v3095_v33  ;;  %294 = vmatmul.mubr.bf16.vlgmr.msra.gmra.mxu1 %v3095_v33 }
  0x23   :  { %537 = vmatpush1.bf16.msra.mxu0 %v3126_v2  ;;  %568 = vmatprep.mubr.bf16.mxu0 %v3094_v1 }
  0x24   :  { %538 = vmatprep.subr.bf16.mxu0 %v3132_v3  ;;  %578 = vmatpush1.bf16.msra.mxu1 %v3154_v7 }
  0x25   :  { %579 = vmatprep.subr.bf16.mxu1 %v3173_v10  ;;  %609 = vmatprep.mubr.bf16.mxu1 %v3094_v1 }
  0x27   :  { %539 = vmatpush1.bf16.msra.mxu0 %v3138_v4 }
  0x28   :  { %540 = vmatprep.subr.bf16.mxu0 %v3144_v5  ;;  %580 = vmatpush1.bf16.msra.mxu1 %v3178_v11 }
  0x29   :  { %581 = vmatprep.subr.bf16.mxu1 %v3195_v14 }
  0x2b   :  { %541 = vmatpush1.bf16.msra.mxu0 %v3160_v8 }
  0x2c   :  { %542 = vmatprep.subr.bf16.mxu0 %v3167_v9  ;;  %582 = vmatpush1.bf16.msra.mxu1 %v3202_v15 }
  0x2d   :  { %583 = vmatprep.subr.bf16.mxu1 %v3208_v16 }
  0x2f   :  { %543 = vmatpush1.bf16.msra.mxu0 %v3185_v12 }
  0x30   :  { %544 = vmatprep.subr.bf16.mxu0 %v3190_v13  ;;  %584 = vmatpush1.bf16.msra.mxu1 %v3226_v19 }
  0x31   :  { %585 = vmatprep.subr.bf16.mxu1 %v3232_v20 }
  0x33   :  { %545 = vmatpush1.bf16.msra.mxu0 %v3214_v17 }
  0x34   :  { %546 = vmatprep.subr.bf16.mxu0 %v3220_v18  ;;  %586 = vmatpush1.bf16.msra.mxu1 %v3250_v23 }
  0x35   :  { %587 = vmatprep.subr.bf16.mxu1 %v3261_v25 }
  0x37   :  { %547 = vmatpush1.bf16.msra.mxu0 %v3238_v21 }
  0x38   :  { %548 = vmatprep.subr.bf16.mxu0 %v3243_v22  ;;  %588 = vmatpush1.bf16.msra.mxu1 %v3271_v27 }
  0x39   :  { %589 = vmatprep.subr.bf16.mxu1 %v3277_v28 }
  0x3b   :  { %549 = vmatpush1.bf16.msra.mxu0 %v3255_v24 }
  0x3c   :  { %550 = vmatprep.subr.bf16.mxu0 %v3266_v26  ;;  %590 = vmatpush1.bf16.msra.mxu1 %v3290_v30 }
  0x3d   :  { %591 = vmatprep.subr.bf16.mxu1 %v3296_v31 }
  0x3f   :  { %551 = vmatpush1.bf16.msra.mxu0 %v3284_v29 }
  0x40   :  { %853 = vmatprep.subr.bf16.mxu0 %v3119_v0  ;;  %592 = vmatpush1.bf16.msra.mxu1 %v3306_v32 }
  0x41   :  { %894 = vmatprep.subr.bf16.mxu1 %v3149_v6 }
  0xe2   :  { %v254_v37 = vpop.f32.mrf.mxu0  ;;  %v295_v45 = vpop.f32.mrf.mxu1 }
  0xe3   :  { %v302_v38 = vadd.f32 %v254_v37, %v22_v35  ;;  %v304_v53 = vadd.f32 %v295_v45, %v24_v50 }
  0xe4   :  { %v256_v39 = vpop.f32.mrf.mxu0  ;;  %v297_v47 = vpop.f32.mrf.mxu1 }
  0xe5   :  { %v2599_v40 = vmul.f32 -1.442695, %v302_v38  ;;  %v303_v41 = vadd.f32 %v256_v39, %v23_v36  ;;  %v305_v52 = vadd.f32 %v297_v47, %v25_v48 }
  0xe6   :  { %v258_v42 = vpop.f32.mrf.mxu0  ;;  %v299_v49 = vpop.f32.mrf.mxu1 }
  0xe7   :  { %2966 = vpow2.f32 %v2599_v40  ;;  %v2600_v43 = vmul.f32 -1.442695, %v303_v41  ;;  %v2601_v54 = vmul.f32 -1.442695, %v305_v52  ;;  %v2602_v40 = vld [vmem:[%s3808_s0 + $0x10] sm:$0xff] }
  0xe8   :  { %v259_v46 = vpop.f32.mrf.mxu0  ;;  %v300_v51 = vpop.f32.mrf.mxu1  ;;  %v338_v41 = vunpack.c.l.bf16 %v2602_v40  ;;  %v339_v42 = vunpack.c.h.bf16 %v2602_v40 }
  0xe9   :  { %2968 = vpow2.f32 %v2600_v43 }
  0xea   :  { %2970 = vtanh.f32 %v304_v53 }
  0xeb   :  { %2972 = vpow2.f32 %v2601_v54 }
  0xf4   :  { %v2967_v55 = vpop.eup %2966 }
  0xf5   :  { %v309_v56 = vadd.f32 1.0, %v2967_v55 }
  0xf6   :  { %v2969_v57 = vpop.eup %2968 }
  0xf7   :  { %2974 = vrcp.f32 %v309_v56  ;;  %v315_v58 = vadd.f32 1.0, %v2969_v57  ;;  %v2971_v59 = vpop.eup %2970 }
  0xf8   :  { %v2973_v60 = vpop.eup %2972 }
  0xf9   :  { %2976 = vrcp.f32 %v315_v58  ;;  %v322_v63 = vadd.f32 1.0, %v2973_v60 }
  0xfb   :  { %2978 = vrcp.f32 %v322_v63 }
 0x104   :  { %v2975_v61 = vpop.eup %2974 }
 0x105   :  { %v327_v34 = vmul.f32 %v2975_v61, %v2971_v59 }
 0x106   :  { %v2977_v62 = vpop.eup %2976 }
 0x107   :  { %v326_v33 = vmul.f32 0.0, %v2977_v62 }
 0x108   :  { %v2979_v36 = vpop.eup %2978 }
 0x109   :  { %v3352_v35 = vadd.f32 %v327_v34, %v326_v33 }
 0x10b   :  { %2980 = vtanh.f32 %v3352_v35 }
 0x118   :  { %v2981_v37 = vpop.eup %2980 }
 0x119   :  { %v330_v38 = vmul.f32 %v2981_v37, %v2979_v36 }
 0x11b   :  { %v333_v39 = vpack.c.bf16 %v330_v38, %v330_v38 }
 0x11d   :  { %334 = vst [vmem:[%s3809_s2] sm:$0xf] %v333_v39  ;;  %569 = vmatmul.mubr.bf16.vlgmr.msra.gmra.mxu0 %v333_v39  ;;  %610 = vmatmul.mubr.bf16.vlgmr.msra.gmra.mxu1 %v333_v39 }
 0x11e   :  { %854 = vmatpush1.bf16.msra.mxu0 %v3126_v2  ;;  %895 = vmatpush1.bf16.msra.mxu1 %v3154_v7 }
 0x11f   :  { %855 = vmatprep.subr.bf16.mxu0 %v3132_v3  ;;  %896 = vmatprep.subr.bf16.mxu1 %v3173_v10 }
 0x120   :  { %885 = vmatprep.mubr.bf16.mxu0 %v3094_v1  ;;  %926 = vmatprep.mubr.bf16.mxu1 %v3094_v1 }
 0x122   :  { %856 = vmatpush1.bf16.msra.mxu0 %v3138_v4  ;;  %897 = vmatpush1.bf16.msra.mxu1 %v3178_v11 }
 0x123   :  { %857 = vmatprep.subr.bf16.mxu0 %v3144_v5  ;;  %898 = vmatprep.subr.bf16.mxu1 %v3195_v14 }
 0x126   :  { %858 = vmatpush1.bf16.msra.mxu0 %v3160_v8  ;;  %899 = vmatpush1.bf16.msra.mxu1 %v3202_v15 }
 0x127   :  { %859 = vmatprep.subr.bf16.mxu0 %v3167_v9  ;;  %900 = vmatprep.subr.bf16.mxu1 %v3208_v16 }
 0x12a   :  { %860 = vmatpush1.bf16.msra.mxu0 %v3185_v12  ;;  %901 = vmatpush1.bf16.msra.mxu1 %v3226_v19 }
 0x12b   :  { %861 = vmatprep.subr.bf16.mxu0 %v3190_v13  ;;  %902 = vmatprep.subr.bf16.mxu1 %v3232_v20 }
 0x12e   :  { %862 = vmatpush1.bf16.msra.mxu0 %v3214_v17  ;;  %903 = vmatpush1.bf16.msra.mxu1 %v3250_v23 }
 0x12f   :  { %863 = vmatprep.subr.bf16.mxu0 %v3220_v18  ;;  %904 = vmatprep.subr.bf16.mxu1 %v3261_v25 }
 0x132   :  { %864 = vmatpush1.bf16.msra.mxu0 %v3238_v21  ;;  %905 = vmatpush1.bf16.msra.mxu1 %v3271_v27 }
 0x133   :  { %865 = vmatprep.subr.bf16.mxu0 %v3243_v22  ;;  %906 = vmatprep.subr.bf16.mxu1 %v3277_v28 }
 0x136   :  { %866 = vmatpush1.bf16.msra.mxu0 %v3255_v24  ;;  %907 = vmatpush1.bf16.msra.mxu1 %v3290_v30 }
 0x137   :  { %867 = vmatprep.subr.bf16.mxu0 %v3266_v26  ;;  %908 = vmatprep.subr.bf16.mxu1 %v3296_v31 }
 0x13a   :  { %868 = vmatpush1.bf16.msra.mxu0 %v3284_v29  ;;  %909 = vmatpush1.bf16.msra.mxu1 %v3306_v32 }
 0x13b   :  { %1170 = vmatprep.subr.bf16.mxu0 %v3119_v0  ;;  %1211 = vmatprep.subr.bf16.mxu1 %v3149_v6  ;;  %v2603_v6 = vld [vmem:[%s3808_s0 + $0x18] sm:$0xff] }
 0x13c   :  { %v341_v54 = vunpack.c.h.bf16 %v2603_v6  ;;  %v340_v56 = vunpack.c.l.bf16 %v2603_v6  ;;  %v3479_v6 = vld [vmem:[%s3807_s1 + $0xc4] ss:$16 sps:$4 sm:$0xff]  }
 0x1dd   :  { %v570_v43 = vpop.f32.mrf.mxu0  ;;  %v611_v44 = vpop.f32.mrf.mxu1 }
 0x1de   :  { %v618_v45 = vadd.f32 %v570_v43, %v338_v41  ;;  %v620_v59 = vadd.f32 %v611_v44, %v340_v56  ;;  %v3494_v56 = vld [vmem:[%s3807_s1 + $0xc8] ss:$16 sps:$4 sm:$0xff]  }
 0x1df   :  { %v572_v46 = vpop.f32.mrf.mxu0  ;;  %v613_v47 = vpop.f32.mrf.mxu1 }
 0x1e0   :  { %v2636_v48 = vmul.f32 -1.442695, %v618_v45  ;;  %v619_v49 = vadd.f32 %v572_v46, %v339_v42  ;;  %v621_v55 = vadd.f32 %v613_v47, %v341_v54  ;;  %v3484_v54 = vld [vmem:[%s3807_s1 + $0xcc] ss:$16 sps:$4 sm:$0xff]  }
 0x1e1   :  { %v574_v50 = vpop.f32.mrf.mxu0  ;;  %v615_v51 = vpop.f32.mrf.mxu1 }
 0x1e2   :  { %2982 = vpow2.f32 %v2636_v48  ;;  %v2637_v52 = vmul.f32 -1.442695, %v619_v49  ;;  %v2638_v57 = vmul.f32 -1.442695, %v621_v55  ;;  %v3455_v51 = vld [vmem:[%s3807_s1 + $0xe4] ss:$16 sps:$4 sm:$0xff]  }
 0x1e3   :  { %v575_v0 = vpop.f32.mrf.mxu0  ;;  %v616_v53 = vpop.f32.mrf.mxu1  ;;  %v3489_v55 = vld [vmem:[%s3807_s1 + $0xc0] ss:$16 sps:$4 sm:$0xff]  }
 0x1e4   :  { %2984 = vpow2.f32 %v2637_v52  ;;  %v3460_v52 = vld [vmem:[%s3807_s1 + $0xec] ss:$16 sps:$4 sm:$0xff]   ;;  %v3465_v0 = vld [vmem:[%s3807_s1 + $0xe0] ss:$16 sps:$4 sm:$0xff]   ;;  %v3470_v53 = vld [vmem:[%s3807_s1 + $0xe8] ss:$16 sps:$4 sm:$0xff]  }
 0x1e5   :  { %2986 = vpow2.f32 %v2638_v57  ;;  %v3503_v57 = vld [vmem:[%s3807_s1 + $0xa4] ss:$16 sps:$4 sm:$0xff]  }
 0x1ef   :  { %v2983_v58 = vpop.eup %2982 }
 0x1f0   :  { %v625_v60 = vadd.f32 1.0, %v2983_v58  ;;  %v3508_v58 = vld [vmem:[%s3807_s1 + $0xac] ss:$16 sps:$4 sm:$0xff]  }
 0x1f1   :  { %v2985_v61 = vpop.eup %2984 }
 0x1f2   :  { %2988 = vrcp.f32 %v625_v60  ;;  %v631_v62 = vadd.f32 1.0, %v2985_v61  ;;  %v2987_v63 = vpop.eup %2986  ;;  %v3518_v60 = vld [vmem:[%s3807_s1 + $0xa8] ss:$16 sps:$4 sm:$0xff]   ;;  %v3527_v61 = vld [vmem:[%s3807_s1 + $0x84] ss:$16 sps:$4 sm:$0xff]  }
 0x1f3   :  { %2990 = vtanh.f32 %v620_v59  ;;  %v638_v37 = vadd.f32 1.0, %v2987_v63  ;;  %v3513_v59 = vld [vmem:[%s3807_s1 + $0xa0] ss:$16 sps:$4 sm:$0xff]  }
 0x1f4   :  { %2992 = vrcp.f32 %v631_v62  ;;  %v3532_v62 = vld [vmem:[%s3807_s1 + $0x8c] ss:$16 sps:$4 sm:$0xff]   ;;  %v3537_v63 = vld [vmem:[%s3807_s1 + $0x80] ss:$16 sps:$4 sm:$0xff]  }
 0x1f5   :  { %2994 = vrcp.f32 %v638_v37  ;;  %v3561_v37 = vld [vmem:[%s3807_s1 + $0x60] ss:$16 sps:$4 sm:$0xff]  }
 0x1ff   :  { %v2989_v33 = vpop.eup %2988 }
 0x200   :  { %v2991_v34 = vpop.eup %2990 }
 0x201   :  { %v2993_v36 = vpop.eup %2992  ;;  %v643_v38 = vmul.f32 %v2991_v34, %v2989_v33  ;;  %v3542_v33 = vld [vmem:[%s3807_s1 + $0x88] ss:$16 sps:$4 sm:$0xff]   ;;  %v3549_v34 = vld [vmem:[%s3807_s1 + $0x64] ss:$16 sps:$4 sm:$0xff]  }
 0x202   :  { %v642_v39 = vmul.f32 %v2993_v36, %v3352_v35  ;;  %v2995_v41 = vpop.eup %2994  ;;  %v3554_v36 = vld [vmem:[%s3807_s1 + $0x6c] ss:$16 sps:$4 sm:$0xff]  }
 0x204   :  { %v3399_v40 = vadd.f32 %v643_v38, %v642_v39  ;;  %v3566_v38 = vld [vmem:[%s3807_s1 + $0x68] ss:$16 sps:$4 sm:$0xff]   ;;  %v3573_v39 = vld [vmem:[%s3807_s1 + $0x44] ss:$16 sps:$4 sm:$0xff]  }
 0x206   :  { %2996 = vtanh.f32 %v3399_v40 }
 0x213   :  { %v2997_v42 = vpop.eup %2996 }
 0x214   :  { %v646_v43 = vmul.f32 %v2997_v42, %v2995_v41  ;;  %v3585_v41 = vld [vmem:[%s3807_s1 + $0x40] ss:$16 sps:$4 sm:$0xff]   ;;  %v3590_v42 = vld [vmem:[%s3807_s1 + $0x48] ss:$16 sps:$4 sm:$0xff]  }
 0x216   :  { %v649_v44 = vpack.c.bf16 %v646_v43, %v646_v43  ;;  %v3597_v43 = vld [vmem:[%s3807_s1 + $0x24] ss:$16 sps:$4 sm:$0xff]  }
 0x218   :  { %2639 = vst [vmem:[%s3809_s2 + $0x4] sm:$0xf] %v649_v44  ;;  %886 = vmatmul.mubr.bf16.vlgmr.msra.gmra.mxu0 %v649_v44  ;;  %927 = vmatmul.mubr.bf16.vlgmr.msra.gmra.mxu1 %v649_v44  ;;  %v3602_v44 = vld [vmem:[%s3807_s1 + $0x2c] ss:$16 sps:$4 sm:$0xff]  }
 0x219   :  { %1171 = vmatpush1.bf16.msra.mxu0 %v3126_v2  ;;  %1212 = vmatpush1.bf16.msra.mxu1 %v3154_v7  ;;  %v2640_v2 = vld [vmem:[%s3808_s0 + $0x20] sm:$0xff] }
 0x21a   :  { %1172 = vmatprep.subr.bf16.mxu0 %v3132_v3  ;;  %1213 = vmatprep.subr.bf16.mxu1 %v3173_v10  ;;  %v655_v3 = vunpack.c.l.bf16 %v2640_v2 }
 0x21b   :  { %1202 = vmatprep.mubr.bf16.mxu0 %v3094_v1  ;;  %1243 = vmatprep.mubr.bf16.mxu1 %v3094_v1 }
 0x21d   :  { %1173 = vmatpush1.bf16.msra.mxu0 %v3138_v4  ;;  %1214 = vmatpush1.bf16.msra.mxu1 %v3178_v11  ;;  %v656_v4 = vunpack.c.h.bf16 %v2640_v2  ;;  %v3609_v2 = vld [vmem:[%s3807_s1 + $0x20] ss:$16 sps:$4 sm:$0xff]  }
 0x21e   :  { %1174 = vmatprep.subr.bf16.mxu0 %v3144_v5  ;;  %1215 = vmatprep.subr.bf16.mxu1 %v3195_v14 }
 0x221   :  { %1175 = vmatpush1.bf16.msra.mxu0 %v3160_v8  ;;  %1216 = vmatpush1.bf16.msra.mxu1 %v3202_v15 }
 0x222   :  { %1176 = vmatprep.subr.bf16.mxu0 %v3167_v9  ;;  %1217 = vmatprep.subr.bf16.mxu1 %v3208_v16 }
 0x225   :  { %1177 = vmatpush1.bf16.msra.mxu0 %v3185_v12  ;;  %1218 = vmatpush1.bf16.msra.mxu1 %v3226_v19 }
 0x226   :  { %1178 = vmatprep.subr.bf16.mxu0 %v3190_v13  ;;  %1219 = vmatprep.subr.bf16.mxu1 %v3232_v20 }
 0x229   :  { %1179 = vmatpush1.bf16.msra.mxu0 %v3214_v17  ;;  %1220 = vmatpush1.bf16.msra.mxu1 %v3250_v23 }
 0x22a   :  { %1180 = vmatprep.subr.bf16.mxu0 %v3220_v18  ;;  %1221 = vmatprep.subr.bf16.mxu1 %v3261_v25  ;;  %v2641_v18 = vld [vmem:[%s3808_s0 + $0x28] sm:$0xff] }
 0x22b   :  { %v658_v19 = vunpack.c.h.bf16 %v2641_v18 }
 0x22d   :  { %1181 = vmatpush1.bf16.msra.mxu0 %v3238_v21  ;;  %1222 = vmatpush1.bf16.msra.mxu1 %v3271_v27  ;;  %v657_v21 = vunpack.c.l.bf16 %v2641_v18 }
 0x22e   :  { %1182 = vmatprep.subr.bf16.mxu0 %v3243_v22  ;;  %1223 = vmatprep.subr.bf16.mxu1 %v3277_v28 }
 0x231   :  { %1183 = vmatpush1.bf16.msra.mxu0 %v3255_v24  ;;  %1224 = vmatpush1.bf16.msra.mxu1 %v3290_v30 }
 0x232   :  { %1184 = vmatprep.subr.bf16.mxu0 %v3266_v26  ;;  %1225 = vmatprep.subr.bf16.mxu1 %v3296_v31 }
 0x235   :  { %1185 = vmatpush1.bf16.msra.mxu0 %v3284_v29  ;;  %1226 = vmatpush1.bf16.msra.mxu1 %v3306_v32 }
 0x236   :  { %1487 = vmatprep.subr.bf16.mxu0 %v3455_v51  ;;  %1528 = vmatprep.subr.bf16.mxu1 %v3460_v52 }
 0x2d8   :  { %v887_v5 = vpop.f32.mrf.mxu0  ;;  %v928_v7 = vpop.f32.mrf.mxu1 }
 0x2d9   :  { %v935_v8 = vadd.f32 %v887_v5, %v655_v3  ;;  %v937_v24 = vadd.f32 %v928_v7, %v657_v21  ;;  %v3614_v3 = vld [vmem:[%s3807_s1 + $0x28] ss:$16 sps:$4 sm:$0xff]   ;;  %v3626_v5 = vld [vmem:[%s3807_s1 + $0xc] ss:$16 sps:$4 sm:$0xff]   ;;  %v3633_v7 = vld [vmem:[%s3807_s1] ss:$16 sps:$4 sm:$0xff]  }
 0x2da   :  { %v889_v9 = vpop.f32.mrf.mxu0  ;;  %v930_v10 = vpop.f32.mrf.mxu1 }
 0x2db   :  { %v2674_v11 = vmul.f32 -1.442695, %v935_v8  ;;  %v936_v12 = vadd.f32 %v889_v9, %v656_v4  ;;  %v938_v20 = vadd.f32 %v930_v10, %v658_v19  ;;  %v3621_v4 = vld [vmem:[%s3807_s1 + $0x4] ss:$16 sps:$4 sm:$0xff]   ;;  %v3638_v8 = vld [vmem:[%s3807_s1 + $0x8] ss:$16 sps:$4 sm:$0xff]  }
 0x2dc   :  { %v891_v13 = vpop.f32.mrf.mxu0  ;;  %v932_v14 = vpop.f32.mrf.mxu1  ;;  %v2678_v9 = vld [vmem:[%s3808_s0 + $0x30] sm:$0xff] }
 0x2dd   :  { %2998 = vpow2.f32 %v2674_v11  ;;  %v2675_v15 = vmul.f32 -1.442695, %v936_v12  ;;  %v2676_v22 = vmul.f32 -1.442695, %v938_v20  ;;  %v972_v10 = vunpack.c.l.bf16 %v2678_v9 }
 0x2de   :  { %v892_v16 = vpop.f32.mrf.mxu0  ;;  %v933_v17 = vpop.f32.mrf.mxu1  ;;  %v973_v11 = vunpack.c.h.bf16 %v2678_v9 }
 0x2df   :  { %3000 = vpow2.f32 %v2675_v15 }
 0x2e0   :  { %3002 = vpow2.f32 %v2676_v22 }
 0x2ea   :  { %v2999_v23 = vpop.eup %2998 }
 0x2eb   :  { %v942_v25 = vadd.f32 1.0, %v2999_v23 }
 0x2ec   :  { %v3001_v26 = vpop.eup %3000 }
 0x2ed   :  { %3004 = vrcp.f32 %v942_v25  ;;  %v948_v27 = vadd.f32 1.0, %v3001_v26  ;;  %v3003_v28 = vpop.eup %3002 }
 0x2ee   :  { %3006 = vtanh.f32 %v937_v24  ;;  %v955_v32 = vadd.f32 1.0, %v3003_v28  ;;  %v2679_v24 = vld [vmem:[%s3808_s0 + $0x38] sm:$0xff] }
 0x2ef   :  { %3008 = vrcp.f32 %v948_v27  ;;  %v975_v25 = vunpack.c.h.bf16 %v2679_v24  ;;  %v974_v27 = vunpack.c.l.bf16 %v2679_v24 }
 0x2f0   :  { %3010 = vrcp.f32 %v955_v32 }
 0x2fa   :  { %v3005_v29 = vpop.eup %3004 }
 0x2fb   :  { %v3007_v30 = vpop.eup %3006 }
 0x2fc   :  { %v3009_v31 = vpop.eup %3008  ;;  %v960_v35 = vmul.f32 %v3007_v30, %v3005_v29 }
 0x2fd   :  { %v959_v45 = vmul.f32 %v3009_v31, %v3399_v40  ;;  %v3011_v47 = vpop.eup %3010  ;;  %v3578_v40 = vld [vmem:[%s3807_s1 + $0x4c] ss:$16 sps:$4 sm:$0xff]  }
 0x2ff   :  { %v3444_v46 = vadd.f32 %v960_v35, %v959_v45 }
 0x301   :  { %3012 = vtanh.f32 %v3444_v46 }
 0x30e   :  { %v3013_v48 = vpop.eup %3012 }
 0x30f   :  { %v963_v49 = vmul.f32 %v3013_v48, %v3011_v47 }
 0x311   :  { %v966_v50 = vpack.c.bf16 %v963_v49, %v963_v49 }
 0x313   :  { %2677 = vst [vmem:[%s3809_s2 + $0x8] sm:$0xf] %v966_v50  ;;  %1203 = vmatmul.mubr.bf16.vlgmr.msra.gmra.mxu0 %v966_v50  ;;  %1244 = vmatmul.mubr.bf16.vlgmr.msra.gmra.mxu1 %v966_v50 }
 0x314   :  { %1519 = vmatprep.mubr.bf16.mxu0 %v3094_v1  ;;  %1560 = vmatprep.mubr.bf16.mxu1 %v3094_v1 }
 0x315   :  { %1488 = vmatpush1.bf16.msra.mxu0 %v3465_v0  ;;  %1529 = vmatpush1.bf16.msra.mxu1 %v3470_v53 }
 0x316   :  { %1489 = vmatprep.subr.bf16.mxu0 %v3479_v6  ;;  %1530 = vmatprep.subr.bf16.mxu1 %v3484_v54 }
 0x319   :  { %1490 = vmatpush1.bf16.msra.mxu0 %v3489_v55  ;;  %1531 = vmatpush1.bf16.msra.mxu1 %v3494_v56 }
 0x31a   :  { %1491 = vmatprep.subr.bf16.mxu0 %v3503_v57  ;;  %1532 = vmatprep.subr.bf16.mxu1 %v3508_v58 }
 0x31d   :  { %1492 = vmatpush1.bf16.msra.mxu0 %v3513_v59  ;;  %1533 = vmatpush1.bf16.msra.mxu1 %v3518_v60 }
 0x31e   :  { %1493 = vmatprep.subr.bf16.mxu0 %v3527_v61  ;;  %1534 = vmatprep.subr.bf16.mxu1 %v3532_v62 }
 0x321   :  { %1494 = vmatpush1.bf16.msra.mxu0 %v3537_v63  ;;  %1535 = vmatpush1.bf16.msra.mxu1 %v3542_v33 }
 0x322   :  { %1495 = vmatprep.subr.bf16.mxu0 %v3549_v34  ;;  %1536 = vmatprep.subr.bf16.mxu1 %v3554_v36 }
 0x325   :  { %1496 = vmatpush1.bf16.msra.mxu0 %v3561_v37  ;;  %1537 = vmatpush1.bf16.msra.mxu1 %v3566_v38 }
 0x326   :  { %1497 = vmatprep.subr.bf16.mxu0 %v3573_v39  ;;  %1538 = vmatprep.subr.bf16.mxu1 %v3578_v40 }
 0x329   :  { %1498 = vmatpush1.bf16.msra.mxu0 %v3585_v41  ;;  %1539 = vmatpush1.bf16.msra.mxu1 %v3590_v42 }
 0x32a   :  { %1499 = vmatprep.subr.bf16.mxu0 %v3597_v43  ;;  %1540 = vmatprep.subr.bf16.mxu1 %v3602_v44 }
 0x32d   :  { %1500 = vmatpush1.bf16.msra.mxu0 %v3609_v2  ;;  %1541 = vmatpush1.bf16.msra.mxu1 %v3614_v3 }
 0x32e   :  { %1501 = vmatprep.subr.bf16.mxu0 %v3621_v4  ;;  %1542 = vmatprep.subr.bf16.mxu1 %v3626_v5 }
 0x331   :  { %1502 = vmatpush1.bf16.msra.mxu0 %v3633_v7  ;;  %1543 = vmatpush1.bf16.msra.mxu1 %v3638_v8 }
 0x332   :  { %1804 = vmatprep.subr.bf16.mxu0 %v3455_v51  ;;  %1845 = vmatprep.subr.bf16.mxu1 %v3460_v52 }
 0x3d3   :  { %v1204_v12 = vpop.f32.mrf.mxu0  ;;  %v1245_v13 = vpop.f32.mrf.mxu1 }
 0x3d4   :  { %v1252_v14 = vadd.f32 %v1204_v12, %v972_v10  ;;  %v1254_v30 = vadd.f32 %v1245_v13, %v974_v27 }
 0x3d5   :  { %v1206_v15 = vpop.f32.mrf.mxu0  ;;  %v1247_v16 = vpop.f32.mrf.mxu1 }
 0x3d6   :  { %v2712_v17 = vmul.f32 -1.442695, %v1252_v14  ;;  %v1253_v18 = vadd.f32 %v1206_v15, %v973_v11  ;;  %v1255_v26 = vadd.f32 %v1247_v16, %v975_v25 }
 0x3d7   :  { %v1208_v19 = vpop.f32.mrf.mxu0  ;;  %v1249_v20 = vpop.f32.mrf.mxu1 }
 0x3d8   :  { %3014 = vpow2.f32 %v2712_v17  ;;  %v2713_v21 = vmul.f32 -1.442695, %v1253_v18  ;;  %v2714_v28 = vmul.f32 -1.442695, %v1255_v26 }
 0x3d9   :  { %v1209_v22 = vpop.f32.mrf.mxu0  ;;  %v1250_v23 = vpop.f32.mrf.mxu1 }
 0x3da   :  { %3016 = vpow2.f32 %v2713_v21 }
 0x3db   :  { %3018 = vpow2.f32 %v2714_v28 }
 0x3e5   :  { %v3015_v29 = vpop.eup %3014 }
 0x3e6   :  { %v1259_v31 = vadd.f32 1.0, %v3015_v29 }
 0x3e7   :  { %v3017_v32 = vpop.eup %3016 }
 0x3e8   :  { %3020 = vrcp.f32 %v1259_v31  ;;  %v1265_v35 = vadd.f32 1.0, %v3017_v32  ;;  %v3019_v45 = vpop.eup %3018 }
 0x3e9   :  { %3022 = vtanh.f32 %v1254_v30  ;;  %v1272_v50 = vadd.f32 1.0, %v3019_v45  ;;  %v2717_v30 = vld [vmem:[%s3808_s0 + $0x48] sm:$0xff] }
 0x3ea   :  { %3024 = vrcp.f32 %v1265_v35  ;;  %v1292_v31 = vunpack.c.h.bf16 %v2717_v30  ;;  %v1291_v35 = vunpack.c.l.bf16 %v2717_v30 }
 0x3eb   :  { %3026 = vrcp.f32 %v1272_v50 }
 0x3f5   :  { %v3021_v47 = vpop.eup %3020 }
 0x3f6   :  { %v3023_v48 = vpop.eup %3022 }
 0x3f7   :  { %v3025_v49 = vpop.eup %3024  ;;  %v1277_v9 = vmul.f32 %v3023_v48, %v3021_v47 }
 0x3f8   :  { %v1276_v10 = vmul.f32 %v3025_v49, %v3444_v46  ;;  %v3027_v12 = vpop.eup %3026  ;;  %v2716_v46 = vld [vmem:[%s3808_s0 + $0x40] sm:$0xff] }
 0x3f9   :  { %v1289_v16 = vunpack.c.l.bf16 %v2716_v46  ;;  %v1290_v17 = vunpack.c.h.bf16 %v2716_v46 }
 0x3fa   :  { %v3653_v11 = vadd.f32 %v1277_v9, %v1276_v10 }
 0x3fc   :  { %3028 = vtanh.f32 %v3653_v11 }
 0x409   :  { %v3029_v13 = vpop.eup %3028 }
 0x40a   :  { %v1280_v14 = vmul.f32 %v3029_v13, %v3027_v12 }
 0x40c   :  { %v1283_v15 = vpack.c.bf16 %v1280_v14, %v1280_v14 }
 0x40e   :  { %2715 = vst [vmem:[%s3809_s2 + $0xc] sm:$0xf] %v1283_v15  ;;  %1520 = vmatmul.mubr.bf16.vlgmr.msra.gmra.mxu0 %v1283_v15  ;;  %1561 = vmatmul.mubr.bf16.vlgmr.msra.gmra.mxu1 %v1283_v15 }
 0x40f   :  { %1805 = vmatpush1.bf16.msra.mxu0 %v3465_v0  ;;  %1846 = vmatpush1.bf16.msra.mxu1 %v3470_v53 }
 0x410   :  { %1806 = vmatprep.subr.bf16.mxu0 %v3479_v6  ;;  %1847 = vmatprep.subr.bf16.mxu1 %v3484_v54 }
 0x411   :  { %1836 = vmatprep.mubr.bf16.mxu0 %v3094_v1  ;;  %1877 = vmatprep.mubr.bf16.mxu1 %v3094_v1 }
 0x413   :  { %1807 = vmatpush1.bf16.msra.mxu0 %v3489_v55  ;;  %1848 = vmatpush1.bf16.msra.mxu1 %v3494_v56 }
 0x414   :  { %1808 = vmatprep.subr.bf16.mxu0 %v3503_v57  ;;  %1849 = vmatprep.subr.bf16.mxu1 %v3508_v58 }
 0x417   :  { %1809 = vmatpush1.bf16.msra.mxu0 %v3513_v59  ;;  %1850 = vmatpush1.bf16.msra.mxu1 %v3518_v60 }
 0x418   :  { %1810 = vmatprep.subr.bf16.mxu0 %v3527_v61  ;;  %1851 = vmatprep.subr.bf16.mxu1 %v3532_v62 }
 0x41b   :  { %1811 = vmatpush1.bf16.msra.mxu0 %v3537_v63  ;;  %1852 = vmatpush1.bf16.msra.mxu1 %v3542_v33 }
 0x41c   :  { %1812 = vmatprep.subr.bf16.mxu0 %v3549_v34  ;;  %1853 = vmatprep.subr.bf16.mxu1 %v3554_v36 }
 0x41f   :  { %1813 = vmatpush1.bf16.msra.mxu0 %v3561_v37  ;;  %1854 = vmatpush1.bf16.msra.mxu1 %v3566_v38 }
 0x420   :  { %1814 = vmatprep.subr.bf16.mxu0 %v3573_v39  ;;  %1855 = vmatprep.subr.bf16.mxu1 %v3578_v40 }
 0x423   :  { %1815 = vmatpush1.bf16.msra.mxu0 %v3585_v41  ;;  %1856 = vmatpush1.bf16.msra.mxu1 %v3590_v42 }
 0x424   :  { %1816 = vmatprep.subr.bf16.mxu0 %v3597_v43  ;;  %1857 = vmatprep.subr.bf16.mxu1 %v3602_v44 }
 0x427   :  { %1817 = vmatpush1.bf16.msra.mxu0 %v3609_v2  ;;  %1858 = vmatpush1.bf16.msra.mxu1 %v3614_v3 }
 0x428   :  { %1818 = vmatprep.subr.bf16.mxu0 %v3621_v4  ;;  %1859 = vmatprep.subr.bf16.mxu1 %v3626_v5 }
 0x42b   :  { %1819 = vmatpush1.bf16.msra.mxu0 %v3633_v7  ;;  %1860 = vmatpush1.bf16.msra.mxu1 %v3638_v8 }
 0x42c   :  { %2121 = vmatprep.subr.bf16.mxu0 %v3455_v51  ;;  %2162 = vmatprep.subr.bf16.mxu1 %v3460_v52 }
 0x4ce   :  { %v1521_v18 = vpop.f32.mrf.mxu0  ;;  %v1562_v19 = vpop.f32.mrf.mxu1 }
 0x4cf   :  { %v1569_v20 = vadd.f32 %v1521_v18, %v1289_v16  ;;  %v1571_v48 = vadd.f32 %v1562_v19, %v1291_v35 }
 0x4d0   :  { %v1523_v21 = vpop.f32.mrf.mxu0  ;;  %v1564_v22 = vpop.f32.mrf.mxu1 }
 0x4d1   :  { %v2750_v23 = vmul.f32 -1.442695, %v1569_v20  ;;  %v1570_v24 = vadd.f32 %v1523_v21, %v1290_v17  ;;  %v1572_v32 = vadd.f32 %v1564_v22, %v1292_v31 }
 0x4d2   :  { %v1525_v25 = vpop.f32.mrf.mxu0  ;;  %v1566_v26 = vpop.f32.mrf.mxu1 }
 0x4d3   :  { %3030 = vpow2.f32 %v2750_v23  ;;  %v2751_v27 = vmul.f32 -1.442695, %v1570_v24  ;;  %v2752_v45 = vmul.f32 -1.442695, %v1572_v32 }
 0x4d4   :  { %v1526_v28 = vpop.f32.mrf.mxu0  ;;  %v1567_v29 = vpop.f32.mrf.mxu1 }
 0x4d5   :  { %3032 = vpow2.f32 %v2751_v27 }
 0x4d6   :  { %3034 = vpow2.f32 %v2752_v45 }
 0x4e0   :  { %v3031_v47 = vpop.eup %3030 }
 0x4e1   :  { %v1576_v49 = vadd.f32 1.0, %v3031_v47 }
 0x4e2   :  { %v3033_v50 = vpop.eup %3032 }
 0x4e3   :  { %3036 = vrcp.f32 %v1576_v49  ;;  %v1582_v9 = vadd.f32 1.0, %v3033_v50  ;;  %v3035_v10 = vpop.eup %3034 }
 0x4e4   :  { %3038 = vtanh.f32 %v1571_v48  ;;  %v1589_v15 = vadd.f32 1.0, %v3035_v10 }
 0x4e5   :  { %3040 = vrcp.f32 %v1582_v9 }
 0x4e6   :  { %3042 = vrcp.f32 %v1589_v15 }
 0x4f0   :  { %v3037_v12 = vpop.eup %3036 }
 0x4f1   :  { %v3039_v13 = vpop.eup %3038 }
 0x4f2   :  { %v3041_v14 = vpop.eup %3040  ;;  %v1594_v46 = vmul.f32 %v3039_v13, %v3037_v12 }
 0x4f3   :  { %v1593_v16 = vmul.f32 %v3041_v14, %v3653_v11  ;;  %v3043_v18 = vpop.eup %3042  ;;  %v2754_v11 = vld [vmem:[%s3808_s0 + $0x50] sm:$0xff] }
 0x4f4   :  { %v1606_v22 = vunpack.c.l.bf16 %v2754_v11  ;;  %v1607_v23 = vunpack.c.h.bf16 %v2754_v11 }
 0x4f5   :  { %v3700_v17 = vadd.f32 %v1594_v46, %v1593_v16 }
 0x4f7   :  { %3044 = vtanh.f32 %v3700_v17 }
 0x504   :  { %v3045_v19 = vpop.eup %3044 }
 0x505   :  { %v1597_v20 = vmul.f32 %v3045_v19, %v3043_v18 }
 0x507   :  { %v1600_v21 = vpack.c.bf16 %v1597_v20, %v1597_v20 }
 0x509   :  { %2753 = vst [vmem:[%s3809_s2 + $0x10] sm:$0xf] %v1600_v21  ;;  %1837 = vmatmul.mubr.bf16.vlgmr.msra.gmra.mxu0 %v1600_v21  ;;  %1878 = vmatmul.mubr.bf16.vlgmr.msra.gmra.mxu1 %v1600_v21 }
 0x50a   :  { %2122 = vmatpush1.bf16.msra.mxu0 %v3465_v0  ;;  %2163 = vmatpush1.bf16.msra.mxu1 %v3470_v53 }
 0x50b   :  { %2123 = vmatprep.subr.bf16.mxu0 %v3479_v6  ;;  %2164 = vmatprep.subr.bf16.mxu1 %v3484_v54 }
 0x50c   :  { %2153 = vmatprep.mubr.bf16.mxu0 %v3094_v1  ;;  %2194 = vmatprep.mubr.bf16.mxu1 %v3094_v1 }
 0x50e   :  { %2124 = vmatpush1.bf16.msra.mxu0 %v3489_v55  ;;  %2165 = vmatpush1.bf16.msra.mxu1 %v3494_v56 }
 0x50f   :  { %2125 = vmatprep.subr.bf16.mxu0 %v3503_v57  ;;  %2166 = vmatprep.subr.bf16.mxu1 %v3508_v58 }
 0x512   :  { %2126 = vmatpush1.bf16.msra.mxu0 %v3513_v59  ;;  %2167 = vmatpush1.bf16.msra.mxu1 %v3518_v60 }
 0x513   :  { %2127 = vmatprep.subr.bf16.mxu0 %v3527_v61  ;;  %2168 = vmatprep.subr.bf16.mxu1 %v3532_v62 }
 0x516   :  { %2128 = vmatpush1.bf16.msra.mxu0 %v3537_v63  ;;  %2169 = vmatpush1.bf16.msra.mxu1 %v3542_v33 }
 0x517   :  { %2129 = vmatprep.subr.bf16.mxu0 %v3549_v34  ;;  %2170 = vmatprep.subr.bf16.mxu1 %v3554_v36 }
 0x51a   :  { %2130 = vmatpush1.bf16.msra.mxu0 %v3561_v37  ;;  %2171 = vmatpush1.bf16.msra.mxu1 %v3566_v38 }
 0x51b   :  { %2131 = vmatprep.subr.bf16.mxu0 %v3573_v39  ;;  %2172 = vmatprep.subr.bf16.mxu1 %v3578_v40 }
 0x51e   :  { %2132 = vmatpush1.bf16.msra.mxu0 %v3585_v41  ;;  %2173 = vmatpush1.bf16.msra.mxu1 %v3590_v42 }
 0x51f   :  { %2133 = vmatprep.subr.bf16.mxu0 %v3597_v43  ;;  %2174 = vmatprep.subr.bf16.mxu1 %v3602_v44 }
 0x522   :  { %2134 = vmatpush1.bf16.msra.mxu0 %v3609_v2  ;;  %2175 = vmatpush1.bf16.msra.mxu1 %v3614_v3 }
 0x523   :  { %2135 = vmatprep.subr.bf16.mxu0 %v3621_v4  ;;  %2176 = vmatprep.subr.bf16.mxu1 %v3626_v5 }
 0x526   :  { %2136 = vmatpush1.bf16.msra.mxu0 %v3633_v7  ;;  %2177 = vmatpush1.bf16.msra.mxu1 %v3638_v8 }
 0x527   :  { %2438 = vmatprep.subr.bf16.mxu0 %v3455_v51  ;;  %2479 = vmatprep.subr.bf16.mxu1 %v3460_v52  ;;  %v2755_v52 = vld [vmem:[%s3808_s0 + $0x58] sm:$0xff] }
 0x528   :  { %v1609_v47 = vunpack.c.h.bf16 %v2755_v52  ;;  %v1608_v49 = vunpack.c.l.bf16 %v2755_v52 }
 0x5c9   :  { %v1838_v24 = vpop.f32.mrf.mxu0  ;;  %v1879_v25 = vpop.f32.mrf.mxu1 }
 0x5ca   :  { %v1886_v26 = vadd.f32 %v1838_v24, %v1606_v22  ;;  %v1888_v10 = vadd.f32 %v1879_v25, %v1608_v49 }
 0x5cb   :  { %v1840_v27 = vpop.f32.mrf.mxu0  ;;  %v1881_v28 = vpop.f32.mrf.mxu1 }
 0x5cc   :  { %v2788_v29 = vmul.f32 -1.442695, %v1886_v26  ;;  %v1887_v30 = vadd.f32 %v1840_v27, %v1607_v23  ;;  %v1889_v48 = vadd.f32 %v1881_v28, %v1609_v47 }
 0x5cd   :  { %v1842_v31 = vpop.f32.mrf.mxu0  ;;  %v1883_v32 = vpop.f32.mrf.mxu1 }
 0x5ce   :  { %3046 = vpow2.f32 %v2788_v29  ;;  %v2789_v35 = vmul.f32 -1.442695, %v1887_v30  ;;  %v2790_v50 = vmul.f32 -1.442695, %v1889_v48  ;;  %v2830_v31 = vld [vmem:[%s3808_s0 + $0x70] sm:$0xff] }
 0x5cf   :  { %v1843_v51 = vpop.f32.mrf.mxu0  ;;  %v1884_v45 = vpop.f32.mrf.mxu1  ;;  %v2240_v32 = vunpack.c.l.bf16 %v2830_v31 }
 0x5d0   :  { %3048 = vpow2.f32 %v2789_v35  ;;  %v2241_v35 = vunpack.c.h.bf16 %v2830_v31 }
 0x5d1   :  { %3050 = vpow2.f32 %v2790_v50 }
 0x5db   :  { %v3047_v9 = vpop.eup %3046 }
 0x5dc   :  { %v1893_v12 = vadd.f32 1.0, %v3047_v9 }
 0x5dd   :  { %v3049_v13 = vpop.eup %3048 }
 0x5de   :  { %3052 = vrcp.f32 %v1893_v12  ;;  %v1899_v14 = vadd.f32 1.0, %v3049_v13  ;;  %v3051_v15 = vpop.eup %3050 }
 0x5df   :  { %3054 = vtanh.f32 %v1888_v10  ;;  %v1906_v19 = vadd.f32 1.0, %v3051_v15  ;;  %v2831_v15 = vld [vmem:[%s3808_s0 + $0x78] sm:$0xff] }
 0x5e0   :  { %3056 = vrcp.f32 %v1899_v14 }
 0x5e1   :  { %3058 = vrcp.f32 %v1906_v19 }
 0x5eb   :  { %v3053_v46 = vpop.eup %3052 }
 0x5ec   :  { %v3055_v16 = vpop.eup %3054 }
 0x5ed   :  { %v3057_v18 = vpop.eup %3056  ;;  %v1911_v20 = vmul.f32 %v3055_v16, %v3053_v46  ;;  %v2243_v46 = vunpack.c.h.bf16 %v2831_v15 }
 0x5ee   :  { %v1910_v21 = vmul.f32 %v3057_v18, %v3700_v17  ;;  %v3059_v22 = vpop.eup %3058  ;;  %v2242_v18 = vunpack.c.l.bf16 %v2831_v15 }
 0x5f0   :  { %v3747_v11 = vadd.f32 %v1911_v20, %v1910_v21 }
 0x5f2   :  { %3060 = vtanh.f32 %v3747_v11 }
 0x5ff   :  { %v3061_v23 = vpop.eup %3060 }
 0x600   :  { %v1914_v24 = vmul.f32 %v3061_v23, %v3059_v22 }
 0x602   :  { %v1917_v25 = vpack.c.bf16 %v1914_v24, %v1914_v24 }
 0x604   :  { %2791 = vst [vmem:[%s3809_s2 + $0x14] sm:$0xf] %v1917_v25  ;;  %2154 = vmatmul.mubr.bf16.vlgmr.msra.gmra.mxu0 %v1917_v25  ;;  %2195 = vmatmul.mubr.bf16.vlgmr.msra.gmra.mxu1 %v1917_v25 }
 0x605   :  { %2439 = vmatpush1.bf16.msra.mxu0 %v3465_v0  ;;  %2480 = vmatpush1.bf16.msra.mxu1 %v3470_v53 }
 0x606   :  { %2440 = vmatprep.subr.bf16.mxu0 %v3479_v6  ;;  %2481 = vmatprep.subr.bf16.mxu1 %v3484_v54 }
 0x607   :  { %2470 = vmatprep.mubr.bf16.mxu0 %v3094_v1  ;;  %2511 = vmatprep.mubr.bf16.mxu1 %v3094_v1  ;;  %v2792_v1 = vld [vmem:[%s3808_s0 + $0x60] sm:$0xff] }
 0x608   :  { %v1923_v0 = vunpack.c.l.bf16 %v2792_v1  ;;  %v1924_v53 = vunpack.c.h.bf16 %v2792_v1 }
 0x609   :  { %2441 = vmatpush1.bf16.msra.mxu0 %v3489_v55  ;;  %2482 = vmatpush1.bf16.msra.mxu1 %v3494_v56 }
 0x60a   :  { %2442 = vmatprep.subr.bf16.mxu0 %v3503_v57  ;;  %2483 = vmatprep.subr.bf16.mxu1 %v3508_v58 }
 0x60d   :  { %2443 = vmatpush1.bf16.msra.mxu0 %v3513_v59  ;;  %2484 = vmatpush1.bf16.msra.mxu1 %v3518_v60 }
 0x60e   :  { %2444 = vmatprep.subr.bf16.mxu0 %v3527_v61  ;;  %2485 = vmatprep.subr.bf16.mxu1 %v3532_v62 }
 0x611   :  { %2445 = vmatpush1.bf16.msra.mxu0 %v3537_v63  ;;  %2486 = vmatpush1.bf16.msra.mxu1 %v3542_v33 }
 0x612   :  { %2446 = vmatprep.subr.bf16.mxu0 %v3549_v34  ;;  %2487 = vmatprep.subr.bf16.mxu1 %v3554_v36  ;;  %v2793_v34 = vld [vmem:[%s3808_s0 + $0x68] sm:$0xff] }
 0x613   :  { %v1926_v36 = vunpack.c.h.bf16 %v2793_v34 }
 0x615   :  { %2447 = vmatpush1.bf16.msra.mxu0 %v3561_v37  ;;  %2488 = vmatpush1.bf16.msra.mxu1 %v3566_v38  ;;  %v1925_v38 = vunpack.c.l.bf16 %v2793_v34 }
 0x616   :  { %2448 = vmatprep.subr.bf16.mxu0 %v3573_v39  ;;  %2489 = vmatprep.subr.bf16.mxu1 %v3578_v40 }
 0x619   :  { %2449 = vmatpush1.bf16.msra.mxu0 %v3585_v41  ;;  %2490 = vmatpush1.bf16.msra.mxu1 %v3590_v42 }
 0x61a   :  { %2450 = vmatprep.subr.bf16.mxu0 %v3597_v43  ;;  %2491 = vmatprep.subr.bf16.mxu1 %v3602_v44 }
 0x61d   :  { %2451 = vmatpush1.bf16.msra.mxu0 %v3609_v2  ;;  %2492 = vmatpush1.bf16.msra.mxu1 %v3614_v3 }
 0x61e   :  { %2452 = vmatprep.subr.bf16.mxu0 %v3621_v4  ;;  %2493 = vmatprep.subr.bf16.mxu1 %v3626_v5 }
 0x621   :  { %2453 = vmatpush1.bf16.msra.mxu0 %v3633_v7  ;;  %2494 = vmatpush1.bf16.msra.mxu1 %v3638_v8 }
 0x6c4   :  { %v2155_v6 = vpop.f32.mrf.mxu0  ;;  %v2196_v54 = vpop.f32.mrf.mxu1 }
 0x6c5   :  { %v2203_v55 = vadd.f32 %v2155_v6, %v1923_v0  ;;  %v2205_v41 = vadd.f32 %v2196_v54, %v1925_v38 }
 0x6c6   :  { %v2157_v56 = vpop.f32.mrf.mxu0  ;;  %v2198_v57 = vpop.f32.mrf.mxu1 }
 0x6c7   :  { %v2826_v58 = vmul.f32 -1.442695, %v2203_v55  ;;  %v2204_v59 = vadd.f32 %v2157_v56, %v1924_v53  ;;  %v2206_v37 = vadd.f32 %v2198_v57, %v1926_v36 }
 0x6c8   :  { %v2159_v60 = vpop.f32.mrf.mxu0  ;;  %v2200_v61 = vpop.f32.mrf.mxu1 }
 0x6c9   :  { %3062 = vpow2.f32 %v2826_v58  ;;  %v2827_v62 = vmul.f32 -1.442695, %v2204_v59  ;;  %v2828_v39 = vmul.f32 -1.442695, %v2206_v37 }
 0x6ca   :  { %v2160_v63 = vpop.f32.mrf.mxu0  ;;  %v2201_v33 = vpop.f32.mrf.mxu1 }
 0x6cb   :  { %3064 = vpow2.f32 %v2827_v62 }
 0x6cc   :  { %3066 = vpow2.f32 %v2828_v39 }
 0x6d6   :  { %v3063_v40 = vpop.eup %3062 }
 0x6d7   :  { %v2210_v42 = vadd.f32 1.0, %v3063_v40 }
 0x6d8   :  { %v3065_v43 = vpop.eup %3064 }
 0x6d9   :  { %3068 = vrcp.f32 %v2210_v42  ;;  %v2216_v44 = vadd.f32 1.0, %v3065_v43  ;;  %v3067_v2 = vpop.eup %3066 }
 0x6da   :  { %3070 = vtanh.f32 %v2205_v41  ;;  %v2223_v7 = vadd.f32 1.0, %v3067_v2 }
 0x6db   :  { %3072 = vrcp.f32 %v2216_v44 }
 0x6dc   :  { %3074 = vrcp.f32 %v2223_v7 }
 0x6e6   :  { %v3069_v3 = vpop.eup %3068 }
 0x6e7   :  { %v3071_v4 = vpop.eup %3070 }
 0x6e8   :  { %v3073_v5 = vpop.eup %3072  ;;  %v2228_v8 = vmul.f32 %v3071_v4, %v3069_v3 }
 0x6e9   :  { %v2227_v17 = vmul.f32 %v3073_v5, %v3747_v11  ;;  %v3075_v27 = vpop.eup %3074 }
 0x6eb   :  { %v2229_v26 = vadd.f32 %v2228_v8, %v2227_v17 }
 0x6ed   :  { %3076 = vtanh.f32 %v2229_v26 }
 0x6fa   :  { %v3077_v28 = vpop.eup %3076 }
 0x6fb   :  { %v2231_v29 = vmul.f32 %v3077_v28, %v3075_v27 }
 0x6fd   :  { %v2234_v30 = vpack.c.bf16 %v2231_v29, %v2231_v29 }
 0x6ff   :  { %2829 = vst [vmem:[%s3809_s2 + $0x18] sm:$0xf] %v2234_v30  ;;  %2471 = vmatmul.mubr.bf16.vlgmr.msra.gmra.mxu0 %v2234_v30  ;;  %2512 = vmatmul.mubr.bf16.vlgmr.msra.gmra.mxu1 %v2234_v30 }
 0x7bf   :  { %v2472_v51 = vpop.f32.mrf.mxu0  ;;  %v2513_v45 = vpop.f32.mrf.mxu1 }
 0x7c0   :  { %v2520_v52 = vadd.f32 %v2472_v51, %v2240_v32  ;;  %v2522_v21 = vadd.f32 %v2513_v45, %v2242_v18 }
 0x7c1   :  { %v2474_v47 = vpop.f32.mrf.mxu0  ;;  %v2515_v48 = vpop.f32.mrf.mxu1 }
 0x7c2   :  { %v2864_v49 = vmul.f32 -1.442695, %v2520_v52  ;;  %v2521_v50 = vadd.f32 %v2474_v47, %v2241_v35  ;;  %v2523_v16 = vadd.f32 %v2515_v48, %v2243_v46 }
 0x7c3   :  { %v2476_v9 = vpop.f32.mrf.mxu0  ;;  %v2517_v10 = vpop.f32.mrf.mxu1 }
 0x7c4   :  { %3078 = vpow2.f32 %v2864_v49  ;;  %v2865_v12 = vmul.f32 -1.442695, %v2521_v50  ;;  %v2866_v19 = vmul.f32 -1.442695, %v2523_v16 }
 0x7c5   :  { %v2477_v13 = vpop.f32.mrf.mxu0  ;;  %v2518_v14 = vpop.f32.mrf.mxu1 }
 0x7c6   :  { %3080 = vpow2.f32 %v2865_v12 }
 0x7c7   :  { %3082 = vpow2.f32 %v2866_v19 }
 0x7d1   :  { %v3079_v20 = vpop.eup %3078 }
 0x7d2   :  { %v2527_v11 = vadd.f32 1.0, %v3079_v20 }
 0x7d3   :  { %v3081_v22 = vpop.eup %3080 }
 0x7d4   :  { %3084 = vrcp.f32 %v2527_v11  ;;  %v2533_v23 = vadd.f32 1.0, %v3081_v22  ;;  %v3083_v24 = vpop.eup %3082 }
 0x7d5   :  { %3086 = vtanh.f32 %v2522_v21  ;;  %v2540_v53 = vadd.f32 1.0, %v3083_v24 }
 0x7d6   :  { %3088 = vrcp.f32 %v2533_v23 }
 0x7d7   :  { %3090 = vrcp.f32 %v2540_v53 }
 0x7e1   :  { %v3085_v25 = vpop.eup %3084 }
 0x7e2   :  { %v3087_v1 = vpop.eup %3086 }
 0x7e3   :  { %v3089_v0 = vpop.eup %3088  ;;  %v2545_v6 = vmul.f32 %v3087_v1, %v3085_v25 }
 0x7e4   :  { %v2544_v54 = vmul.f32 %v3089_v0, %v2229_v26  ;;  %v3091_v56 = vpop.eup %3090 }
 0x7e6   :  { %v2546_v55 = vadd.f32 %v2545_v6, %v2544_v54 }
 0x7e8   :  { %3092 = vtanh.f32 %v2546_v55  ;;  %2558 = vst [vmem:[%s3810_s3] sm:$0xff] %v2546_v55 }
 0x7f5   :  { %v3093_v57 = vpop.eup %3092 }
 0x7f6   :  { %v2548_v58 = vmul.f32 %v3093_v57, %v3091_v56 }
 0x7f8   :  { %v2551_v59 = vpack.c.bf16 %v2548_v58, %v2548_v58 }
 0x7fa   :  { %2867 = vst [vmem:[%s3809_s2 + $0x1c] sm:$0xf] %v2551_v59 }

</bundles_post_ra>
